<compile_context>
chip_gen: v6e
topology: v6e:2x2x1
jax: 0.10.0
libtpu: 0.0.40
codegen_flags: <defaults>
</compile_context>

<pallas_src>
import functools

import jax
import jax.numpy as jnp
from jax.experimental import pallas as pl
from jax.experimental.pallas import tpu as pltpu


def _lowcost_squeeze_kernel(x_ref, w_ref, shift_ref, lw_ref, o_ref,
                            *, kh, kw, ho, wo, stride):
    # x_ref    : (1, Hp, Wp, Cin)      padded NHWC image (one image / grid step)
    # w_ref    : (kh*kw, planes, Cin)  BN-scaled, channel-expanded conv weight
    # shift_ref: (planes, 1)           folded BN shift (f32)
    # lw_ref   : (planes, Ho*Wo)       Lowcost spatial weight (resident)
    # o_ref    : (1, planes, Ho*Wo)    output: channels on sublanes, pixels on lanes
    planes = w_ref.shape[1]
    cin = x_ref.shape[-1]
    acc = jnp.zeros((planes, ho * wo), jnp.float32)
    for i in range(kh):
        for j in range(kw):
            if stride == 1:
                xs = x_ref[0, i:i + ho, j:j + wo, :]              # (Ho, Wo, Cin)
            else:
                # TODO(synk): strided path is not exercised by the self-test.
                xs = x_ref[0, pl.ds(i, ho, stride), pl.ds(j, wo, stride), :]
            xs = xs.reshape(ho * wo, cin)                          # layout-preserving
            # (planes, Cin) x (Ho*Wo, Cin) contracted on Cin -> (planes, Ho*Wo)
            acc = acc + jax.lax.dot_general(
                w_ref[i * kw + j], xs,
                dimension_numbers=(((1,), (1,)), ((), ())),
                preferred_element_type=jnp.float32)
    y = jnp.maximum(acc + shift_ref[...], 0.0)                     # BN shift + ReLU (f32)
    o_ref[0] = (y * lw_ref[...].astype(jnp.float32)).astype(o_ref.dtype)


def lowcost_squeeze_forward(x, conv_w, bn_gamma, bn_beta, bn_mean, bn_var,
                            lc_w, *, stride=1, padding=1, multiply=4,
                            eps=1e-5, stream_dtype=jnp.float32):
    N, Cin, H, W = x.shape
    Csq, Cin_w, kh, kw = conv_w.shape
    assert Cin_w == Cin, (Cin_w, Cin)
    planes = Csq * multiply
    Ho = (H + 2 * padding - kh) // stride + 1
    Wo = (W + 2 * padding - kw) // stride + 1
    # Fail loudly if the Lowcost spatial weight does not match conv output dims.
    assert lc_w.shape == (planes, Ho, Wo), (lc_w.shape, (planes, Ho, Wo))
    Hp, Wp = H + 2 * padding, W + 2 * padding

    # ---- wrapper-side prep (single small passes, no 9x im2col blowup) ----
    # NCHW -> padded NHWC so per-tap windows are cheap in-kernel slices.
    xp = jnp.pad(jnp.transpose(x, (0, 2, 3, 1)),
                 ((0, 0), (padding, padding), (padding, padding), (0, 0)))

    # Fold BN scale into the conv weight; pre-expand channels to `planes`
    # (block repeat matches x.repeat(1, multiply, 1, 1) semantics).
    scale = bn_gamma / jnp.sqrt(bn_var + eps)                      # (Csq,)
    shift = bn_beta - bn_mean * scale                              # (Csq,)
    w_t = (conv_w * scale[:, None, None, None]).transpose(2, 3, 0, 1)
    w_t = w_t.reshape(kh * kw, Csq, Cin)                           # tap-major
    w_exp = jnp.tile(w_t, (1, multiply, 1))                        # (kh*kw, planes, Cin)
    shift_exp = jnp.tile(shift, (multiply,)).reshape(planes, 1).astype(jnp.float32)
    lw = lc_w.reshape(planes, Ho * Wo)                             # NOT tiled over N

    xp = xp.astype(stream_dtype)
    w_exp = w_exp.astype(stream_dtype)
    lw = lw.astype(stream_dtype)

    kernel = functools.partial(_lowcost_squeeze_kernel,
                               kh=kh, kw=kw, ho=Ho, wo=Wo, stride=stride)

    out = pl.pallas_call(
        kernel,
        out_shape=jax.ShapeDtypeStruct((N, planes, Ho * Wo), jnp.float32),
        grid_spec=pltpu.PrefetchScalarGridSpec(
            num_scalar_prefetch=0,
            grid=(N,),                                             # >=2 parallel iters (v7x)
            in_specs=[
                pl.BlockSpec((1, Hp, Wp, Cin), lambda n: (n, 0, 0, 0)),      # image
                pl.BlockSpec((kh * kw, planes, Cin), lambda n: (0, 0, 0)),   # weight (resident)
                pl.BlockSpec((planes, 1), lambda n: (0, 0)),                 # bn shift (resident)
                pl.BlockSpec((planes, Ho * Wo), lambda n: (0, 0)),           # lowcost w (resident)
            ],
            out_specs=pl.BlockSpec((1, planes, Ho * Wo), lambda n: (n, 0, 0)),
        ),
        compiler_params=pltpu.CompilerParams(
            dimension_semantics=("parallel",)),
    )(xp, w_exp, shift_exp, lw)

    # Output already (N, planes, Ho*Wo): NCHW view is a free reshape.
    return out.reshape(N, planes, Ho, Wo)


def _reference(x, conv_w, bn_gamma, bn_beta, bn_mean, bn_var, lc_w,
               *, stride=1, padding=1, multiply=4, eps=1e-5):
    y = jax.lax.conv_general_dilated(
        x, conv_w, window_strides=(stride, stride),
        padding=((padding, padding), (padding, padding)),
        dimension_numbers=("NCHW", "OIHW", "NCHW"))
    scale = bn_gamma / jnp.sqrt(bn_var + eps)
    shift = bn_beta - bn_mean * scale
    y = y * scale[None, :, None, None] + shift[None, :, None, None]
    y = jnp.maximum(y, 0.0)
    y = jnp.tile(y, (1, multiply, 1, 1))          # x.repeat(1, mult, 1, 1)
    return y * lc_w[None, :, :, :]


if __name__ == "__main__":
    # small shapes consistent with the module
    N, in_planes, planes = 2, 4, 16
    H = W = 16
    stride, padding, multiply = 1, 1, 4
    Csq = planes // multiply

    key = jax.random.PRNGKey(0)
    ks = jax.random.split(key, 7)
    x = jax.random.normal(ks[0], (N, in_planes, H, W), jnp.float32)
    conv_w = jax.random.normal(ks[1], (Csq, in_planes, 3, 3), jnp.float32) * 0.1
    bn_gamma = 1.0 + 0.1 * jax.random.normal(ks[2], (Csq,), jnp.float32)
    bn_beta = 0.1 * jax.random.normal(ks[3], (Csq,), jnp.float32)
    bn_mean = 0.1 * jax.random.normal(ks[4], (Csq,), jnp.float32)
    bn_var = jax.random.uniform(ks[5], (Csq,), jnp.float32, 0.5, 1.5)
    lc_w = jax.random.normal(ks[6], (planes, H, W), jnp.float32)

    ref = _reference(x, conv_w, bn_gamma, bn_beta, bn_mean, bn_var, lc_w,
                     stride=stride, padding=padding, multiply=multiply)

    # float32 streams: strict check against the XLA reference.
    out = lowcost_squeeze_forward(
        x, conv_w, bn_gamma, bn_beta, bn_mean, bn_var, lc_w,
        stride=stride, padding=padding, multiply=multiply)
    out = jax.block_until_ready(out)
    assert out.shape == (N, planes, H, W), out.shape
    assert jnp.allclose(out, ref, atol=1e-4, rtol=1e-4), (
        float(jnp.max(jnp.abs(out - ref))))

    # bfloat16 HBM/MXU streams (f32 accumulation + f32 post-ops): loose check.
    out_bf16 = lowcost_squeeze_forward(
        x, conv_w, bn_gamma, bn_beta, bn_mean, bn_var, lc_w,
        stride=stride, padding=padding, multiply=multiply,
        stream_dtype=jnp.bfloat16)
    out_bf16 = jax.block_until_ready(out_bf16)
    assert jnp.allclose(out_bf16, ref, atol=1e-1, rtol=1e-1), (
        float(jnp.max(jnp.abs(out_bf16 - ref))))

    print("KERNEL_OK")
</pallas_src>

<mosaic_0001>
module attributes {stable_mosaic.version = 11 : i64} {
  func.func @_lowcost_squeeze_kernel(%arg0: i32, %arg1: memref<1x18x18x4xf32, #tpu.memory_space<vmem>>, %arg2: memref<9x16x4xf32, #tpu.memory_space<vmem>>, %arg3: memref<16x1xf32, #tpu.memory_space<vmem>>, %arg4: memref<16x256xf32, #tpu.memory_space<vmem>>, %arg5: memref<1x16x256xf32, #tpu.memory_space<vmem>>) attributes {dimension_semantics = [#tpu.dimension_semantics<parallel>], iteration_bounds = array<i64: 2>, scalar_prefetch = 0 : i64, scratch_operands = 0 : i64, tpu.core_type = #tpu.core_type<tc>, window_params = [{transform_indices = @transform_0, window_bounds = array<i64: 1, 18, 18, 4>}, {pipeline_mode = #tpu.pipeline_mode<synchronous>, transform_indices = @transform_1, window_bounds = array<i64: 9, 16, 4>}, {pipeline_mode = #tpu.pipeline_mode<synchronous>, transform_indices = @transform_2, window_bounds = array<i64: 16, 1>}, {pipeline_mode = #tpu.pipeline_mode<synchronous>, transform_indices = @transform_3, window_bounds = array<i64: 16, 256>}, {transform_indices = @transform_4, window_bounds = array<i64: 1, 16, 256>}]} {
    %cst = arith.constant 0.000000e+00 : f32
    %0 = vector.broadcast %cst : f32 to vector<16x256xf32>
    %c0 = arith.constant 0 : index
    %c0_0 = arith.constant 0 : index
    %c0_1 = arith.constant 0 : index
    %c0_2 = arith.constant 0 : index
    %1 = vector.load %arg1[%c0, %c0_0, %c0_1, %c0_2] : memref<1x18x18x4xf32, #tpu.memory_space<vmem>>, vector<1x16x16x4xf32>
    %2 = vector.shape_cast %1 : vector<1x16x16x4xf32> to vector<16x16x4xf32>
    %3 = vector.shape_cast %2 : vector<16x16x4xf32> to vector<256x4xf32>
    %c0_3 = arith.constant 0 : index
    %c0_4 = arith.constant 0 : index
    %c0_5 = arith.constant 0 : index
    %4 = vector.load %arg2[%c0_3, %c0_4, %c0_5] : memref<9x16x4xf32, #tpu.memory_space<vmem>>, vector<1x16x4xf32>
    %5 = vector.shape_cast %4 : vector<1x16x4xf32> to vector<16x4xf32>
    %cst_6 = arith.constant dense<0.000000e+00> : vector<16x256xf32>
    %6 = tpu.matmul %5, %3, %cst_6 {dimension_numbers = #tpu.dot_dimension_numbers<[1], [1], [0], [0], [0, 0, 1, 0], [], []>} : vector<16x4xf32>, vector<256x4xf32>, vector<16x256xf32> -> vector<16x256xf32>
    %7 = arith.addf %0, %6 : vector<16x256xf32>
    %c0_7 = arith.constant 0 : index
    %c0_8 = arith.constant 0 : index
    %c1 = arith.constant 1 : index
    %c0_9 = arith.constant 0 : index
    %8 = vector.load %arg1[%c0_7, %c0_8, %c1, %c0_9] : memref<1x18x18x4xf32, #tpu.memory_space<vmem>>, vector<1x16x16x4xf32>
    %9 = vector.shape_cast %8 : vector<1x16x16x4xf32> to vector<16x16x4xf32>
    %10 = vector.shape_cast %9 : vector<16x16x4xf32> to vector<256x4xf32>
    %c1_10 = arith.constant 1 : index
    %c0_11 = arith.constant 0 : index
    %c0_12 = arith.constant 0 : index
    %11 = vector.load %arg2[%c1_10, %c0_11, %c0_12] : memref<9x16x4xf32, #tpu.memory_space<vmem>>, vector<1x16x4xf32>
    %12 = vector.shape_cast %11 : vector<1x16x4xf32> to vector<16x4xf32>
    %cst_13 = arith.constant dense<0.000000e+00> : vector<16x256xf32>
    %13 = tpu.matmul %12, %10, %cst_13 {dimension_numbers = #tpu.dot_dimension_numbers<[1], [1], [0], [0], [0, 0, 1, 0], [], []>} : vector<16x4xf32>, vector<256x4xf32>, vector<16x256xf32> -> vector<16x256xf32>
    %14 = arith.addf %7, %13 : vector<16x256xf32>
    %c0_14 = arith.constant 0 : index
    %c0_15 = arith.constant 0 : index
    %c2 = arith.constant 2 : index
    %c0_16 = arith.constant 0 : index
    %15 = vector.load %arg1[%c0_14, %c0_15, %c2, %c0_16] : memref<1x18x18x4xf32, #tpu.memory_space<vmem>>, vector<1x16x16x4xf32>
    %16 = vector.shape_cast %15 : vector<1x16x16x4xf32> to vector<16x16x4xf32>
    %17 = vector.shape_cast %16 : vector<16x16x4xf32> to vector<256x4xf32>
    %c2_17 = arith.constant 2 : index
    %c0_18 = arith.constant 0 : index
    %c0_19 = arith.constant 0 : index
    %18 = vector.load %arg2[%c2_17, %c0_18, %c0_19] : memref<9x16x4xf32, #tpu.memory_space<vmem>>, vector<1x16x4xf32>
    %19 = vector.shape_cast %18 : vector<1x16x4xf32> to vector<16x4xf32>
    %cst_20 = arith.constant dense<0.000000e+00> : vector<16x256xf32>
    %20 = tpu.matmul %19, %17, %cst_20 {dimension_numbers = #tpu.dot_dimension_numbers<[1], [1], [0], [0], [0, 0, 1, 0], [], []>} : vector<16x4xf32>, vector<256x4xf32>, vector<16x256xf32> -> vector<16x256xf32>
    %21 = arith.addf %14, %20 : vector<16x256xf32>
    %c0_21 = arith.constant 0 : index
    %c1_22 = arith.constant 1 : index
    %c0_23 = arith.constant 0 : index
    %c0_24 = arith.constant 0 : index
    %22 = vector.load %arg1[%c0_21, %c1_22, %c0_23, %c0_24] : memref<1x18x18x4xf32, #tpu.memory_space<vmem>>, vector<1x16x16x4xf32>
    %23 = vector.shape_cast %22 : vector<1x16x16x4xf32> to vector<16x16x4xf32>
    %24 = vector.shape_cast %23 : vector<16x16x4xf32> to vector<256x4xf32>
    %c3 = arith.constant 3 : index
    %c0_25 = arith.constant 0 : index
    %c0_26 = arith.constant 0 : index
    %25 = vector.load %arg2[%c3, %c0_25, %c0_26] : memref<9x16x4xf32, #tpu.memory_space<vmem>>, vector<1x16x4xf32>
    %26 = vector.shape_cast %25 : vector<1x16x4xf32> to vector<16x4xf32>
    %cst_27 = arith.constant dense<0.000000e+00> : vector<16x256xf32>
    %27 = tpu.matmul %26, %24, %cst_27 {dimension_numbers = #tpu.dot_dimension_numbers<[1], [1], [0], [0], [0, 0, 1, 0], [], []>} : vector<16x4xf32>, vector<256x4xf32>, vector<16x256xf32> -> vector<16x256xf32>
    %28 = arith.addf %21, %27 : vector<16x256xf32>
    %c0_28 = arith.constant 0 : index
    %c1_29 = arith.constant 1 : index
    %c1_30 = arith.constant 1 : index
    %c0_31 = arith.constant 0 : index
    %29 = vector.load %arg1[%c0_28, %c1_29, %c1_30, %c0_31] : memref<1x18x18x4xf32, #tpu.memory_space<vmem>>, vector<1x16x16x4xf32>
    %30 = vector.shape_cast %29 : vector<1x16x16x4xf32> to vector<16x16x4xf32>
    %31 = vector.shape_cast %30 : vector<16x16x4xf32> to vector<256x4xf32>
    %c4 = arith.constant 4 : index
    %c0_32 = arith.constant 0 : index
    %c0_33 = arith.constant 0 : index
    %32 = vector.load %arg2[%c4, %c0_32, %c0_33] : memref<9x16x4xf32, #tpu.memory_space<vmem>>, vector<1x16x4xf32>
    %33 = vector.shape_cast %32 : vector<1x16x4xf32> to vector<16x4xf32>
    %cst_34 = arith.constant dense<0.000000e+00> : vector<16x256xf32>
    %34 = tpu.matmul %33, %31, %cst_34 {dimension_numbers = #tpu.dot_dimension_numbers<[1], [1], [0], [0], [0, 0, 1, 0], [], []>} : vector<16x4xf32>, vector<256x4xf32>, vector<16x256xf32> -> vector<16x256xf32>
    %35 = arith.addf %28, %34 : vector<16x256xf32>
    %c0_35 = arith.constant 0 : index
    %c1_36 = arith.constant 1 : index
    %c2_37 = arith.constant 2 : index
    %c0_38 = arith.constant 0 : index
    %36 = vector.load %arg1[%c0_35, %c1_36, %c2_37, %c0_38] : memref<1x18x18x4xf32, #tpu.memory_space<vmem>>, vector<1x16x16x4xf32>
    %37 = vector.shape_cast %36 : vector<1x16x16x4xf32> to vector<16x16x4xf32>
    %38 = vector.shape_cast %37 : vector<16x16x4xf32> to vector<256x4xf32>
    %c5 = arith.constant 5 : index
    %c0_39 = arith.constant 0 : index
    %c0_40 = arith.constant 0 : index
    %39 = vector.load %arg2[%c5, %c0_39, %c0_40] : memref<9x16x4xf32, #tpu.memory_space<vmem>>, vector<1x16x4xf32>
    %40 = vector.shape_cast %39 : vector<1x16x4xf32> to vector<16x4xf32>
    %cst_41 = arith.constant dense<0.000000e+00> : vector<16x256xf32>
    %41 = tpu.matmul %40, %38, %cst_41 {dimension_numbers = #tpu.dot_dimension_numbers<[1], [1], [0], [0], [0, 0, 1, 0], [], []>} : vector<16x4xf32>, vector<256x4xf32>, vector<16x256xf32> -> vector<16x256xf32>
    %42 = arith.addf %35, %41 : vector<16x256xf32>
    %c0_42 = arith.constant 0 : index
    %c2_43 = arith.constant 2 : index
    %c0_44 = arith.constant 0 : index
    %c0_45 = arith.constant 0 : index
    %43 = vector.load %arg1[%c0_42, %c2_43, %c0_44, %c0_45] : memref<1x18x18x4xf32, #tpu.memory_space<vmem>>, vector<1x16x16x4xf32>
    %44 = vector.shape_cast %43 : vector<1x16x16x4xf32> to vector<16x16x4xf32>
    %45 = vector.shape_cast %44 : vector<16x16x4xf32> to vector<256x4xf32>
    %c6 = arith.constant 6 : index
    %c0_46 = arith.constant 0 : index
    %c0_47 = arith.constant 0 : index
    %46 = vector.load %arg2[%c6, %c0_46, %c0_47] : memref<9x16x4xf32, #tpu.memory_space<vmem>>, vector<1x16x4xf32>
    %47 = vector.shape_cast %46 : vector<1x16x4xf32> to vector<16x4xf32>
    %cst_48 = arith.constant dense<0.000000e+00> : vector<16x256xf32>
    %48 = tpu.matmul %47, %45, %cst_48 {dimension_numbers = #tpu.dot_dimension_numbers<[1], [1], [0], [0], [0, 0, 1, 0], [], []>} : vector<16x4xf32>, vector<256x4xf32>, vector<16x256xf32> -> vector<16x256xf32>
    %49 = arith.addf %42, %48 : vector<16x256xf32>
    %c0_49 = arith.constant 0 : index
    %c2_50 = arith.constant 2 : index
    %c1_51 = arith.constant 1 : index
    %c0_52 = arith.constant 0 : index
    %50 = vector.load %arg1[%c0_49, %c2_50, %c1_51, %c0_52] : memref<1x18x18x4xf32, #tpu.memory_space<vmem>>, vector<1x16x16x4xf32>
    %51 = vector.shape_cast %50 : vector<1x16x16x4xf32> to vector<16x16x4xf32>
    %52 = vector.shape_cast %51 : vector<16x16x4xf32> to vector<256x4xf32>
    %c7 = arith.constant 7 : index
    %c0_53 = arith.constant 0 : index
    %c0_54 = arith.constant 0 : index
    %53 = vector.load %arg2[%c7, %c0_53, %c0_54] : memref<9x16x4xf32, #tpu.memory_space<vmem>>, vector<1x16x4xf32>
    %54 = vector.shape_cast %53 : vector<1x16x4xf32> to vector<16x4xf32>
    %cst_55 = arith.constant dense<0.000000e+00> : vector<16x256xf32>
    %55 = tpu.matmul %54, %52, %cst_55 {dimension_numbers = #tpu.dot_dimension_numbers<[1], [1], [0], [0], [0, 0, 1, 0], [], []>} : vector<16x4xf32>, vector<256x4xf32>, vector<16x256xf32> -> vector<16x256xf32>
    %56 = arith.addf %49, %55 : vector<16x256xf32>
    %c0_56 = arith.constant 0 : index
    %c2_57 = arith.constant 2 : index
    %c2_58 = arith.constant 2 : index
    %c0_59 = arith.constant 0 : index
    %57 = vector.load %arg1[%c0_56, %c2_57, %c2_58, %c0_59] : memref<1x18x18x4xf32, #tpu.memory_space<vmem>>, vector<1x16x16x4xf32>
    %58 = vector.shape_cast %57 : vector<1x16x16x4xf32> to vector<16x16x4xf32>
    %59 = vector.shape_cast %58 : vector<16x16x4xf32> to vector<256x4xf32>
    %c8 = arith.constant 8 : index
    %c0_60 = arith.constant 0 : index
    %c0_61 = arith.constant 0 : index
    %60 = vector.load %arg2[%c8, %c0_60, %c0_61] : memref<9x16x4xf32, #tpu.memory_space<vmem>>, vector<1x16x4xf32>
    %61 = vector.shape_cast %60 : vector<1x16x4xf32> to vector<16x4xf32>
    %cst_62 = arith.constant dense<0.000000e+00> : vector<16x256xf32>
    %62 = tpu.matmul %61, %59, %cst_62 {dimension_numbers = #tpu.dot_dimension_numbers<[1], [1], [0], [0], [0, 0, 1, 0], [], []>} : vector<16x4xf32>, vector<256x4xf32>, vector<16x256xf32> -> vector<16x256xf32>
    %63 = arith.addf %56, %62 : vector<16x256xf32>
    %c0_63 = arith.constant 0 : index
    %c0_64 = arith.constant 0 : index
    %64 = vector.load %arg3[%c0_63, %c0_64] : memref<16x1xf32, #tpu.memory_space<vmem>>, vector<16x1xf32>
    %65 = vector.broadcast %64 : vector<16x1xf32> to vector<16x256xf32>
    %66 = arith.addf %63, %65 : vector<16x256xf32>
    %cst_65 = arith.constant 0.000000e+00 : f32
    %67 = vector.broadcast %cst_65 : f32 to vector<16x256xf32>
    %68 = arith.maximumf %66, %67 : vector<16x256xf32>
    %c0_66 = arith.constant 0 : index
    %c0_67 = arith.constant 0 : index
    %69 = vector.load %arg4[%c0_66, %c0_67] : memref<16x256xf32, #tpu.memory_space<vmem>>, vector<16x256xf32>
    %70 = arith.mulf %68, %69 : vector<16x256xf32>
    %c0_68 = arith.constant 0 : index
    %c0_69 = arith.constant 0 : index
    %c0_70 = arith.constant 0 : index
    %71 = vector.load %arg5[%c0_68, %c0_69, %c0_70] : memref<1x16x256xf32, #tpu.memory_space<vmem>>, vector<1x16x256xf32>
    %72 = vector.shape_cast %71 : vector<1x16x256xf32> to vector<16x256xf32>
    %73 = vector.shape_cast %70 : vector<16x256xf32> to vector<1x16x256xf32>
    tpu.vector_store %arg5[%c0_68, %c0_69, %c0_70], %73 {strides = array<i32>} : memref<1x16x256xf32, #tpu.memory_space<vmem>>, vector<1x16x256xf32>,
    return
  }
  func.func @transform_0(%arg0: i32) -> (i32, i32, i32, i32) {
    %c0_i32 = arith.constant 0 : i32
    %c0_i32_0 = arith.constant 0 : i32
    %c0_i32_1 = arith.constant 0 : i32
    %c0_i32_2 = arith.constant 0 : i32
    return %arg0, %c0_i32, %c0_i32_0, %c0_i32_1 : i32, i32, i32, i32
  }
  func.func @transform_1(%arg0: i32) -> (i32, i32, i32) {
    %c0_i32 = arith.constant 0 : i32
    %c0_i32_0 = arith.constant 0 : i32
    %c0_i32_1 = arith.constant 0 : i32
    %c0_i32_2 = arith.constant 0 : i32
    return %c0_i32, %c0_i32_0, %c0_i32_1 : i32, i32, i32
  }
  func.func @transform_2(%arg0: i32) -> (i32, i32) {
    %c0_i32 = arith.constant 0 : i32
    %c0_i32_0 = arith.constant 0 : i32
    %c0_i32_1 = arith.constant 0 : i32
    return %c0_i32, %c0_i32_0 : i32, i32
  }
  func.func @transform_3(%arg0: i32) -> (i32, i32) {
    %c0_i32 = arith.constant 0 : i32
    %c0_i32_0 = arith.constant 0 : i32
    %c0_i32_1 = arith.constant 0 : i32
    return %c0_i32, %c0_i32_0 : i32, i32
  }
  func.func @transform_4(%arg0: i32) -> (i32, i32, i32) {
    %c0_i32 = arith.constant 0 : i32
    %c0_i32_0 = arith.constant 0 : i32
    %c0_i32_1 = arith.constant 0 : i32
    return %arg0, %c0_i32, %c0_i32_0 : i32, i32, i32
  }
}

</mosaic_0001>

<bundles_post_ra>
// kernel: tpu_custom_call.1
= control target key start
LH: loop header
LB: loop body
LE: loop exit
PB: predicated region body
PF: predicated region fallthrough
CT: control target
= control target key end

     0   :  { %9 = vsyncpa [#allocation3], 0  ;;  %s4459_s0 = inlined_call_operand.vmem [shape: f32[2,18,18,4], index: 0, kind: input, shape index: {}]   ;;  %s4460_s1 = inlined_call_operand.vmem [shape: f32[9,16,4], index: 1, kind: input, shape index: {}]   ;;  %s4461_s2 = inlined_call_operand.vmem [shape: f32[16,1], index: 2, kind: input, shape index: {}]   ;;  %s4462_s3 = inlined_call_operand.vmem [shape: f32[16,256], index: 3, kind: input, shape index: {}]   ;;  %s4463_s4 = inlined_call_operand.hbm [shape: f32[2,16,256], index: 4, kind: output, shape index: {}]  }
   0x1   :  { %11 = vsyncpa [#allocation3 + $0x1], 0  ;;  %s3277_s15 = smov 0   ;;  %s3279_s16 = smov 0  }
   0x2   :  { %s3281_s17 = smov 0   ;;  %s3283_s18 = smov 0  }
   0x3 LB: > { %s3298_s19 = sadd.s32 4294967295, %s3246_s18   ;;  %s2260_s20 = sadd.s32 4294967294, %s3246_s18   ;;  %s3246_s18 = sphi %s3283_s18, %s4602_s18   ;;  %s3242_s17 = sphi %s3281_s17, %s4601_s17   ;;  %s3238_s16 = sphi %s3279_s16, %s4600_s16   ;;  %s3234_s15 = sphi %s3277_s15, %s4599_s15  }
   0x4   : > { %s3302_s21 = sadd.s32 1, %s3246_s18   ;;  %s113_s22 = sadd.s32 1, %s3242_s17 }
   0x5   : > { %s110_s23 = ssub.s32 %s3246_s18, %s3302_s21  ;;  %p123_p0 = scmp.ne.s32.totalorder %s3242_s17, %s3238_s16 }
   0x6   : > { %p111_p1 = scmp.eq.s32.totalorder %s110_s23, 0  ;;  %p124_p2 = scmp.eq.s32.totalorder %s3298_s19, 1 }
   0x7   : > { %p129_p3 = scmp.ne.s32.totalorder %s3238_s16, %s3234_s15  ;;  %p130_p4 = scmp.eq.s32.totalorder %s2260_s20, 1 }
   0x8   : > { %s3313_s24 = scalar_select %p111_p1, %s3242_s17, %s113_s22  }
   0x9   : > { %p3315_p5 = por %p124_p2, %p123_p0  ;;  %p3319_p6 = por %p130_p4, %p129_p3 }
   0xa   : > { %p2263_p7 = scmp.ge.s32.totalorder %s3246_s18, 1  ;;  %p165_p8 = scmp.lt.s32.totalorder %s3246_s18, 3 }
   0xc   : > { %p166_p9 = pnand %p2263_p7, %p165_p8 }
   0xe   : > { %169 = sbr.rel (%p166_p9) target bundleno = 566 (0x236), region = 36 }
  0x13   : > { %p191_p10 = scmp.lt.s32.totalorder %s3298_s19, 1  ;;  %vm265_vm0 = vcmask 31744   ;;  %v3329_v0 = vld [vmem:[%s4460_s1 + $0x10] sm:$0xff]  ;;  %v3334_v1 = vld [vmem:[%s4460_s1] sm:$0xff]  ;;  %s188_s13 = sand.u32 1, %s3238_s16  }
  0x14   : > { %2818 = vmatprep.mubr.msk.f32.mxu0 %vm265_vm0, %v3329_v0  ;;  %2854 = vmatprep.mubr.msk.f32.mxu1 %vm265_vm0, %v3334_v1  ;;  %s2264_s14 = sshll.u32 %s188_s13, 5  ;;  %s2785_s30 = sshll.u32 %s3298_s19, 9 }
  0x15   : > { %s192_s5 = scalar_select %p191_p10, %s3298_s19, 1 }
  0x16   : > { %s190_s28 = scalar_lea.vmem [#allocation2], %s2264_s14  ;;  %s4413_s11 = scalar_lea.hbm %s4463_s4, %s2785_s30 }
  0x17   : > { %s3142_s6 = smul.u32 432, %s192_s5  ;;  %s2198_s29 = sshll.u32 %s190_s28, 4  ;;  %s4415_s29 = int_to_ptr.vmem [resolvable:$true] %s2198_s29 }
  0x18   : > { %s4419_s19 = scalar_lea.sflag [#allocation3], %s188_s13  ;;  %s3186_s12 = scalar_lea.vmem %s4415_s29, 512 }
  0x19   : > { %s3344_s9 = scalar_lea.vmem %s4459_s0, %s3142_s6  ;;  %p3187_p11 = scmp.ne.s32.totalorder %s4415_s29, %s3186_s12 }
  0x1a   : > { %v3347_v2 = vld [vmem:[%s3344_s9 + $0x171] sm:$0xff]  ;;  %v3363_v6 = vld [vmem:[%s3344_s9 + $0x169] sm:$0xff]  ;;  %v3383_v10 = vld [vmem:[%s3344_s9 + $0x159] sm:$0xff]  ;;  %s3249_s14 = smov [#allocation2]  }
  0x1b   : > { %v3350_v3 = vld [vmem:[%s3344_s9 + $0x170] sm:$0xff]  ;;  %2786 = vmatprep.subr.msk.mxu0 %vm265_vm0, %v3347_v2  ;;  %v3366_v7 = vld [vmem:[%s3344_s9 + $0x168] sm:$0xff]  ;;  %v3386_v11 = vld [vmem:[%s3344_s9 + $0x158] sm:$0xff]  ;;  %p3188_p12 = pnand %p3187_p11, %p3315_p5  ;;  %s3190_s20 = sshll.u32 %s3249_s14, 4  ;;  %s3191_s20 = int_to_ptr.vmem [resolvable:$false] %s3190_s20 }
  0x1c   : > { %4517 = vst [vmem:[#allocation5_spill] sm:$0xff] %v3350_v3  ;;  %v3353_v4 = vld [vmem:[%s3344_s9 + $0xb1] sm:$0xff]  ;;  %2822 = vmatprep.subr.msk.mxu1 %vm265_vm0, %v3350_v3  ;;  %4519 = vst [vmem:[#allocation7_spill] sm:$0xff] %v3366_v7  ;;  %v3377_v8 = vld [vmem:[%s3344_s9 + $0xa9] sm:$0xff]  ;;  %s3192_s22 = scalar_lea.vmem %s3191_s20, 1024  ;;  %p3193_p0 = scmp.lt.s32.totalorder %s4415_s29, %s3191_s20 }
  0x1d   : > { %v3360_v5 = vld [vmem:[%s3344_s9 + $0xb0] sm:$0xff]  ;;  %2787 = vmatpush3.xpose.msk.msra.mxu0 %vm265_vm0, %v3353_v4  ;;  %v3380_v9 = vld [vmem:[%s3344_s9 + $0xa8] sm:$0xff]  ;;  %4521 = vst [vmem:[#allocation9_spill] sm:$0xff] %v3386_v11  ;;  %v3397_v12 = vld [vmem:[%s3344_s9 + $0x99] sm:$0xff]  ;;  %p3189_p13 = pneg %p3188_p12  ;;  %p3194_p1 = scmp.lt.s32.totalorder %s3192_s22, %s3186_s12 }
  0x1e   : > { %4518 = vst [vmem:[#allocation6_spill] sm:$0xff] %v3360_v5  ;;  %2823 = vmatpush3.xpose.msk.msra.mxu1 %vm265_vm0, %v3360_v5  ;;  %2788 = vmatprep.subr.msk.mxu0 %vm265_vm0, %v3363_v6  ;;  %4520 = vst [vmem:[#allocation8_spill] sm:$0xff] %v3380_v9  ;;  %v3400_v13 = vld [vmem:[%s3344_s9 + $0x98] sm:$0xff]  ;;  %v3406_v15 = vld [vmem:[%s3344_s9 + $0x150] sm:$0xff] }
  0x1f   : > { %2824 = vmatprep.subr.msk.mxu1 %vm265_vm0, %v3366_v7  ;;  %4522 = vst [vmem:[#allocation10_spill] sm:$0xff] %v3400_v13  ;;  %v3403_v14 = vld [vmem:[%s3344_s9 + $0x151] sm:$0xff]  ;;  %4523 = vst [vmem:[#allocation11_spill] sm:$0xff] %v3406_v15  ;;  %v3423_v18 = vld [vmem:[%s3344_s9 + $0x141] sm:$0xff]  ;;  %p3195_p2 = por %p3194_p1, %p3193_p0 }
  0x20   : > { %v3417_v16 = vld [vmem:[%s3344_s9 + $0x91] sm:$0xff]  ;;  %v3426_v19 = vld [vmem:[%s3344_s9 + $0x140] sm:$0xff]  ;;  %v3463_v26 = vld [vmem:[%s3344_s9 + $0x129] sm:$0xff] }
  0x21   : > { %2789 = vmatpush3.xpose.msk.msra.mxu0 %vm265_vm0, %v3377_v8  ;;  %v3420_v17 = vld [vmem:[%s3344_s9 + $0x90] sm:$0xff]  ;;  %4525 = vst [vmem:[#allocation13_spill] sm:$0xff] %v3426_v19  ;;  %v3437_v20 = vld [vmem:[%s3344_s9 + $0x81] sm:$0xff]  ;;  %v3443_v22 = vld [vmem:[%s3344_s9 + $0x139] sm:$0xff]  ;;  %p3196_p3 = pnand %p3195_p2, %p3189_p13 }
  0x22   : > { %2825 = vmatpush3.xpose.msk.msra.mxu1 %vm265_vm0, %v3380_v9  ;;  %2790 = vmatprep.subr.msk.mxu0 %vm265_vm0, %v3383_v10  ;;  %4524 = vst [vmem:[#allocation12_spill] sm:$0xff] %v3420_v17  ;;  %v3440_v21 = vld [vmem:[%s3344_s9 + $0x80] sm:$0xff]  ;;  %v3446_v23 = vld [vmem:[%s3344_s9 + $0x138] sm:$0xff]  ;;  %v3466_v27 = vld [vmem:[%s3344_s9 + $0x128] sm:$0xff] }
  0x23   : > { %2826 = vmatprep.subr.msk.mxu1 %vm265_vm0, %v3386_v11  ;;  %4526 = vst [vmem:[#allocation14_spill] sm:$0xff] %v3440_v21  ;;  %4527 = vst [vmem:[#allocation15_spill] sm:$0xff] %v3446_v23  ;;  %v3457_v24 = vld [vmem:[%s3344_s9 + $0x79] sm:$0xff]  ;;  %v3477_v28 = vld [vmem:[%s3344_s9 + $0x69] sm:$0xff] }
  0x24   : > { %v3460_v25 = vld [vmem:[%s3344_s9 + $0x78] sm:$0xff]  ;;  %4529 = vst [vmem:[#allocation17_spill] sm:$0xff] %v3466_v27  ;;  %v3480_v29 = vld [vmem:[%s3344_s9 + $0x68] sm:$0xff]  ;;  %v3486_v31 = vld [vmem:[%s3344_s9 + $0x120] sm:$0xff] }
  0x25   : > { %2791 = vmatpush3.xpose.msk.msra.mxu0 %vm265_vm0, %v3397_v12  ;;  %4528 = vst [vmem:[#allocation16_spill] sm:$0xff] %v3460_v25  ;;  %4530 = vst [vmem:[#allocation18_spill] sm:$0xff] %v3480_v29  ;;  %v3483_v30 = vld [vmem:[%s3344_s9 + $0x121] sm:$0xff]  ;;  %v3503_v34 = vld [vmem:[%s3344_s9 + $0x111] sm:$0xff] }
  0x26   : > { %2827 = vmatpush3.xpose.msk.msra.mxu1 %vm265_vm0, %v3400_v13  ;;  %2792 = vmatprep.subr.msk.mxu0 %vm265_vm0, %v3403_v14  ;;  %4531 = vst [vmem:[#allocation19_spill] sm:$0xff] %v3486_v31  ;;  %v3497_v32 = vld [vmem:[%s3344_s9 + $0x61] sm:$0xff]  ;;  %v3506_v35 = vld [vmem:[%s3344_s9 + $0x110] sm:$0xff]  ;;  %v3543_v42 = vld [vmem:[%s3344_s9 + $0xf9] sm:$0xff] }
  0x27   : > { %2828 = vmatprep.subr.msk.mxu1 %vm265_vm0, %v3406_v15  ;;  %v3500_v33 = vld [vmem:[%s3344_s9 + $0x60] sm:$0xff]  ;;  %4533 = vst [vmem:[#allocation21_spill] sm:$0xff] %v3506_v35  ;;  %v3517_v36 = vld [vmem:[%s3344_s9 + $0x51] sm:$0xff]  ;;  %v3523_v38 = vld [vmem:[%s3344_s9 + $0x109] sm:$0xff] }
  0x28   : > { %4532 = vst [vmem:[#allocation20_spill] sm:$0xff] %v3500_v33  ;;  %v3520_v37 = vld [vmem:[%s3344_s9 + $0x50] sm:$0xff]  ;;  %v3526_v39 = vld [vmem:[%s3344_s9 + $0x108] sm:$0xff]  ;;  %v3546_v43 = vld [vmem:[%s3344_s9 + $0xf8] sm:$0xff] }
  0x29   : > { %2793 = vmatpush3.xpose.msk.msra.mxu0 %vm265_vm0, %v3417_v16  ;;  %4534 = vst [vmem:[#allocation22_spill] sm:$0xff] %v3520_v37  ;;  %4535 = vst [vmem:[#allocation23_spill] sm:$0xff] %v3526_v39  ;;  %v3537_v40 = vld [vmem:[%s3344_s9 + $0x49] sm:$0xff]  ;;  %v3557_v44 = vld [vmem:[%s3344_s9 + $0x39] sm:$0xff] }
  0x2a   : > { %2829 = vmatpush3.xpose.msk.msra.mxu1 %vm265_vm0, %v3420_v17  ;;  %2794 = vmatprep.subr.msk.mxu0 %vm265_vm0, %v3423_v18  ;;  %v3540_v41 = vld [vmem:[%s3344_s9 + $0x48] sm:$0xff]  ;;  %4537 = vst [vmem:[#allocation25_spill] sm:$0xff] %v3546_v43  ;;  %v3560_v45 = vld [vmem:[%s3344_s9 + $0x38] sm:$0xff]  ;;  %v3566_v47 = vld [vmem:[%s3344_s9 + $0xf0] sm:$0xff] }
  0x2b   : > { %2830 = vmatprep.subr.msk.mxu1 %vm265_vm0, %v3426_v19  ;;  %4536 = vst [vmem:[#allocation24_spill] sm:$0xff] %v3540_v41  ;;  %4538 = vst [vmem:[#allocation26_spill] sm:$0xff] %v3560_v45  ;;  %v3563_v46 = vld [vmem:[%s3344_s9 + $0xf1] sm:$0xff]  ;;  %v3583_v50 = vld [vmem:[%s3344_s9 + $0xe1] sm:$0xff] }
  0x2c   : > { %4539 = vst [vmem:[#allocation27_spill] sm:$0xff] %v3566_v47  ;;  %v3577_v48 = vld [vmem:[%s3344_s9 + $0x31] sm:$0xff]  ;;  %4542 = vst [vmem:[#allocation30_spill] sm:$0xff] %v3583_v50  ;;  %v3586_v51 = vld [vmem:[%s3344_s9 + $0xe0] sm:$0xff] }
  0x2d   : > { %2795 = vmatpush3.xpose.msk.msra.mxu0 %vm265_vm0, %v3437_v20  ;;  %4540 = vst [vmem:[#allocation28_spill] sm:$0xff] %v3577_v48  ;;  %v3580_v49 = vld [vmem:[%s3344_s9 + $0x30] sm:$0xff]  ;;  %v3597_v52 = vld [vmem:[%s3344_s9 + $0x21] sm:$0xff]  ;;  %v3603_v54 = vld [vmem:[%s3344_s9 + $0xd9] sm:$0xff] }
  0x2e   : > { %2831 = vmatpush3.xpose.msk.msra.mxu1 %vm265_vm0, %v3440_v21  ;;  %2796 = vmatprep.subr.msk.mxu0 %vm265_vm0, %v3443_v22  ;;  %4541 = vst [vmem:[#allocation29_spill] sm:$0xff] %v3580_v49  ;;  %4543 = vst [vmem:[#allocation31_spill] sm:$0xff] %v3597_v52  ;;  %v3600_v53 = vld [vmem:[%s3344_s9 + $0x20] sm:$0xff]  ;;  %v3606_v55 = vld [vmem:[%s3344_s9 + $0xd8] sm:$0xff] }
  0x2f   : > { %2832 = vmatprep.subr.msk.mxu1 %vm265_vm0, %v3446_v23  ;;  %4544 = vst [vmem:[#allocation32_spill] sm:$0xff] %v3603_v54  ;;  %v3617_v56 = vld [vmem:[%s3344_s9 + $0x19] sm:$0xff]  ;;  %v3623_v58 = vld [vmem:[%s3344_s9 + $0xc9] sm:$0xff]  ;;  %v3639_v62 = vld [vmem:[%s3344_s9 + $0xc1] sm:$0xff] }
  0x30   : > { %4545 = vst [vmem:[#allocation33_spill] sm:$0xff] %v3617_v56  ;;  %v3620_v57 = vld [vmem:[%s3344_s9 + $0x18] sm:$0xff]  ;;  %v3626_v59 = vld [vmem:[%s3344_s9 + $0xc8] sm:$0xff]  ;;  %v3642_v63 = vld [vmem:[%s3344_s9 + $0xc0] sm:$0xff] }
  0x31   : > { %2797 = vmatpush3.xpose.msk.msra.mxu0 %vm265_vm0, %v3457_v24  ;;  %4546 = vst [vmem:[#allocation34_spill] sm:$0xff] %v3626_v59  ;;  %v231_v60 = vld [vmem:[%s3344_s9 + $0x9] sm:$0xff]  ;;  %4547 = vst [vmem:[#allocation35_spill] sm:$0xff] %v3642_v63 }
  0x32   : > { %2833 = vmatpush3.xpose.msk.msra.mxu1 %vm265_vm0, %v3460_v25  ;;  %2798 = vmatprep.subr.msk.mxu0 %vm265_vm0, %v3463_v26  ;;  %v197_v61 = vld [vmem:[%s3344_s9 + $0x8] sm:$0xff] }
  0x33   : > { %2834 = vmatprep.subr.msk.mxu1 %vm265_vm0, %v3466_v27 }
  0x35   : > { %2799 = vmatpush3.xpose.msk.msra.mxu0 %vm265_vm0, %v3477_v28 }
  0x36   : > { %2835 = vmatpush3.xpose.msk.msra.mxu1 %vm265_vm0, %v3480_v29  ;;  %2800 = vmatprep.subr.msk.mxu0 %vm265_vm0, %v3483_v30 }
  0x37   : > { %2836 = vmatprep.subr.msk.mxu1 %vm265_vm0, %v3486_v31 }
  0x39   : > { %2801 = vmatpush3.xpose.msk.msra.mxu0 %vm265_vm0, %v3497_v32 }
  0x3a   : > { %2837 = vmatpush3.xpose.msk.msra.mxu1 %vm265_vm0, %v3500_v33  ;;  %2802 = vmatprep.subr.msk.mxu0 %vm265_vm0, %v3503_v34 }
  0x3b   : > { %2838 = vmatprep.subr.msk.mxu1 %vm265_vm0, %v3506_v35 }
  0x3d   : > { %2803 = vmatpush3.xpose.msk.msra.mxu0 %vm265_vm0, %v3517_v36 }
  0x3e   : > { %2839 = vmatpush3.xpose.msk.msra.mxu1 %vm265_vm0, %v3520_v37  ;;  %2804 = vmatprep.subr.msk.mxu0 %vm265_vm0, %v3523_v38 }
  0x3f   : > { %2840 = vmatprep.subr.msk.mxu1 %vm265_vm0, %v3526_v39 }
  0x41   : > { %2805 = vmatpush3.xpose.msk.msra.mxu0 %vm265_vm0, %v3537_v40 }
  0x42   : > { %2841 = vmatpush3.xpose.msk.msra.mxu1 %vm265_vm0, %v3540_v41  ;;  %2806 = vmatprep.subr.msk.mxu0 %vm265_vm0, %v3543_v42 }
  0x43   : > { %2842 = vmatprep.subr.msk.mxu1 %vm265_vm0, %v3546_v43 }
  0x45   : > { %2807 = vmatpush3.xpose.msk.msra.mxu0 %vm265_vm0, %v3557_v44 }
  0x46   : > { %2843 = vmatpush3.xpose.msk.msra.mxu1 %vm265_vm0, %v3560_v45  ;;  %2808 = vmatprep.subr.msk.mxu0 %vm265_vm0, %v3563_v46 }
  0x47   : > { %2844 = vmatprep.subr.msk.mxu1 %vm265_vm0, %v3566_v47 }
  0x49   : > { %2809 = vmatpush3.xpose.msk.msra.mxu0 %vm265_vm0, %v3577_v48  ;;  %v3671_v48 = vld [vmem:[%s3344_s9 + $0x180] sm:$0xff] }
  0x4a   : > { %2845 = vmatpush3.xpose.msk.msra.mxu1 %vm265_vm0, %v3580_v49  ;;  %2810 = vmatprep.subr.msk.mxu0 %vm265_vm0, %v3583_v50  ;;  %v3656_v50 = vld [vmem:[%s3344_s9 + $0x188] sm:$0xff]  ;;  %4549 = vst [vmem:[#allocation37_spill] sm:$0xff] %v3671_v48 }
  0x4b   : > { %2846 = vmatprep.subr.msk.mxu1 %vm265_vm0, %v3586_v51  ;;  %4548 = vst [vmem:[#allocation36_spill] sm:$0xff] %v3656_v50 }
  0x4d   : > { %2811 = vmatpush3.xpose.msk.msra.mxu0 %vm265_vm0, %v3597_v52  ;;  %v3653_v52 = vld [vmem:[%s3344_s9 + $0x172] sm:$0xff] }
  0x4e   : > { %2847 = vmatpush3.xpose.msk.msra.mxu1 %vm265_vm0, %v3600_v53  ;;  %2812 = vmatprep.subr.msk.mxu0 %vm265_vm0, %v3603_v54  ;;  %v196_v54 = vld [vmem:[%s3344_s9] sm:$0xff] }
  0x4f   : > { %2848 = vmatprep.subr.msk.mxu1 %vm265_vm0, %v3606_v55 }
  0x51   : > { %2813 = vmatpush3.xpose.msk.msra.mxu0 %vm265_vm0, %v3617_v56  ;;  %v230_v56 = vld [vmem:[%s3344_s9 + $0x1] sm:$0xff] }
  0x52   : > { %2849 = vmatpush3.xpose.msk.msra.mxu1 %vm265_vm0, %v3620_v57  ;;  %2814 = vmatprep.subr.msk.mxu0 %vm265_vm0, %v3623_v58 }
  0x53   : > { %2850 = vmatprep.subr.msk.mxu1 %vm265_vm0, %v3626_v59 }
  0x55   : > { %2815 = vmatpush3.xpose.msk.msra.mxu0 %vm265_vm0, %v231_v60  ;;  %v3665_v60 = vld [vmem:[%s3344_s9 + $0xb2] sm:$0xff] }
  0x56   : > { %2851 = vmatpush3.xpose.msk.msra.mxu1 %vm265_vm0, %v197_v61  ;;  %2816 = vmatprep.subr.msk.mxu0 %vm265_vm0, %v3639_v62  ;;  %v3668_v61 = vld [vmem:[%s3344_s9 + $0x16a] sm:$0xff] }
  0x57   : > { %2852 = vmatprep.subr.msk.mxu1 %vm265_vm0, %v3642_v63 }
  0x59   : > { %2817 = vmatpush3.xpose.msk.msra.mxu0 %vm265_vm0, %v230_v56  ;;  %v229_v56 = vld [vmem:[%s4460_s1 + $0x8] sm:$0xff] }
  0x5a   : > { %2853 = vmatpush3.xpose.msk.msra.mxu1 %vm265_vm0, %v196_v54  ;;  %2858 = vmatprep.subr.msk.mxu0 %vm265_vm0, %v3653_v52  ;;  %v2267_v54 = vld [vmem:[%s4460_s1 + $0x18] sm:$0xff] }
  0x5b   : > { %2894 = vmatprep.subr.msk.mxu1 %vm265_vm0, %v3656_v50  ;;  %v3893_v50 = vld [vmem:[%s3344_s9 + $0xc2] sm:$0xff] }
  0x5c   : > { %2819 = vmatmul.mubr.msk.f32.vlgmr.msra.gmra.mxu0 %vm265_vm0, %v3329_v0  ;;  %v3692_v0 = vld [vmem:[%s3344_s9 + $0xaa] sm:$0xff] }
  0x5d   : > { %2855 = vmatmul.mubr.msk.f32.vlgmr.msra.gmra.mxu1 %vm265_vm0, %v3334_v1  ;;  %2859 = vmatpush3.xpose.msk.msra.mxu0 %vm265_vm0, %v3665_v60  ;;  %v3695_v1 = vld [vmem:[%s3344_s9 + $0x15a] sm:$0xff] }
  0x5e   : > { %2895 = vmatpush3.xpose.msk.msra.mxu1 %vm265_vm0, %v3626_v59  ;;  %2860 = vmatprep.subr.msk.mxu0 %vm265_vm0, %v3668_v61  ;;  %v3704_v59 = vld [vmem:[%s4460_s1 + $0x20] sm:$0xff] }
  0x5f   : > { %2896 = vmatprep.subr.msk.mxu1 %vm265_vm0, %v3671_v48  ;;  %2820 = vmatprep.mubr.msk.f32.mxu0 %vm265_vm0, %v2267_v54  ;;  %v3709_v48 = vld [vmem:[%s4460_s1 + $0x30] sm:$0xff] }
  0x60   : > { %2856 = vmatprep.mubr.msk.f32.mxu1 %vm265_vm0, %v229_v56  ;;  %2821 = vmatmul.mubr.msk.f32.gmra.mxu0 %vm265_vm0, %v2267_v54  ;;  %v3720_v54 = vld [vmem:[%s3344_s9 + $0x9a] sm:$0xff] }
  0x61   : > { %2857 = vmatmul.mubr.msk.f32.gmra.mxu1 %vm265_vm0, %v229_v56  ;;  %2861 = vmatpush3.xpose.msk.msra.mxu0 %vm265_vm0, %v3692_v0  ;;  %v3723_v56 = vld [vmem:[%s3344_s9 + $0x152] sm:$0xff] }
  0x62   : > { %2897 = vmatpush3.xpose.msk.msra.mxu1 %vm265_vm0, %v3642_v63  ;;  %2862 = vmatprep.subr.msk.mxu0 %vm265_vm0, %v3695_v1  ;;  %v3741_v63 = vld [vmem:[%s3344_s9 + $0x142] sm:$0xff] }
  0x63   : > { %2898 = vmatprep.subr.msk.mxu1 %vm265_vm0, %v3350_v3  ;;  %2890 = vmatprep.mubr.msk.f32.mxu0 %vm265_vm0, %v3704_v59  ;;  %v3738_v3 = vld [vmem:[%s3344_s9 + $0x92] sm:$0xff] }
  0x64   : > { %2926 = vmatprep.mubr.msk.f32.mxu1 %vm265_vm0, %v3709_v48 }
  0x65   : > { %2863 = vmatpush3.xpose.msk.msra.mxu0 %vm265_vm0, %v3720_v54 }
  0x66   : > { %2899 = vmatpush3.xpose.msk.msra.mxu1 %vm265_vm0, %v3360_v5  ;;  %2864 = vmatprep.subr.msk.mxu0 %vm265_vm0, %v3723_v56  ;;  %v3752_v5 = vld [vmem:[%s3344_s9 + $0x82] sm:$0xff] }
  0x67   : > { %2900 = vmatprep.subr.msk.mxu1 %vm265_vm0, %v3366_v7  ;;  %v3755_v7 = vld [vmem:[%s3344_s9 + $0x13a] sm:$0xff] }
  0x69   : > { %2865 = vmatpush3.xpose.msk.msra.mxu0 %vm265_vm0, %v3738_v3 }
  0x6a   : > { %2901 = vmatpush3.xpose.msk.msra.mxu1 %vm265_vm0, %v3380_v9  ;;  %2866 = vmatprep.subr.msk.mxu0 %vm265_vm0, %v3741_v63  ;;  %v3766_v9 = vld [vmem:[%s3344_s9 + $0x7a] sm:$0xff] }
  0x6b   : > { %2902 = vmatprep.subr.msk.mxu1 %vm265_vm0, %v3386_v11  ;;  %v3769_v11 = vld [vmem:[%s3344_s9 + $0x12a] sm:$0xff] }
  0x6d   : > { %2867 = vmatpush3.xpose.msk.msra.mxu0 %vm265_vm0, %v3752_v5 }
  0x6e   : > { %2903 = vmatpush3.xpose.msk.msra.mxu1 %vm265_vm0, %v3400_v13  ;;  %2868 = vmatprep.subr.msk.mxu0 %vm265_vm0, %v3755_v7  ;;  %v3780_v13 = vld [vmem:[%s3344_s9 + $0x6a] sm:$0xff] }
  0x6f   : > { %2904 = vmatprep.subr.msk.mxu1 %vm265_vm0, %v3406_v15  ;;  %v3783_v15 = vld [vmem:[%s3344_s9 + $0x122] sm:$0xff] }
  0x71   : > { %2869 = vmatpush3.xpose.msk.msra.mxu0 %vm265_vm0, %v3766_v9 }
  0x72   : > { %2905 = vmatpush3.xpose.msk.msra.mxu1 %vm265_vm0, %v3420_v17  ;;  %2870 = vmatprep.subr.msk.mxu0 %vm265_vm0, %v3769_v11  ;;  %v3794_v17 = vld [vmem:[%s3344_s9 + $0x62] sm:$0xff] }
  0x73   : > { %2906 = vmatprep.subr.msk.mxu1 %vm265_vm0, %v3426_v19  ;;  %v3797_v19 = vld [vmem:[%s3344_s9 + $0x112] sm:$0xff] }
  0x75   : > { %2871 = vmatpush3.xpose.msk.msra.mxu0 %vm265_vm0, %v3780_v13 }
  0x76   : > { %2907 = vmatpush3.xpose.msk.msra.mxu1 %vm265_vm0, %v3440_v21  ;;  %2872 = vmatprep.subr.msk.mxu0 %vm265_vm0, %v3783_v15  ;;  %v3808_v21 = vld [vmem:[%s3344_s9 + $0x52] sm:$0xff] }
  0x77   : > { %2908 = vmatprep.subr.msk.mxu1 %vm265_vm0, %v3446_v23  ;;  %4550 = vst [vmem:[#allocation38_spill] sm:$0xff] %v3808_v21  ;;  %v3811_v23 = vld [vmem:[%s3344_s9 + $0x10a] sm:$0xff] }
  0x78   : > { %4551 = vst [vmem:[#allocation39_spill] sm:$0xff] %v3811_v23 }
  0x79   : > { %2873 = vmatpush3.xpose.msk.msra.mxu0 %vm265_vm0, %v3794_v17 }
  0x7a   : > { %2909 = vmatpush3.xpose.msk.msra.mxu1 %vm265_vm0, %v3460_v25  ;;  %2874 = vmatprep.subr.msk.mxu0 %vm265_vm0, %v3797_v19  ;;  %v3822_v25 = vld [vmem:[%s3344_s9 + $0x4a] sm:$0xff] }
  0x7b   : > { %2910 = vmatprep.subr.msk.mxu1 %vm265_vm0, %v3466_v27  ;;  %4552 = vst [vmem:[#allocation40_spill] sm:$0xff] %v3822_v25  ;;  %v3825_v27 = vld [vmem:[%s3344_s9 + $0xfa] sm:$0xff] }
  0x7c   : > { %4553 = vst [vmem:[#allocation41_spill] sm:$0xff] %v3825_v27 }
  0x7d   : > { %2875 = vmatpush3.xpose.msk.msra.mxu0 %vm265_vm0, %v3808_v21 }
  0x7e   : > { %2911 = vmatpush3.xpose.msk.msra.mxu1 %vm265_vm0, %v3480_v29  ;;  %2876 = vmatprep.subr.msk.mxu0 %vm265_vm0, %v3811_v23  ;;  %v3836_v29 = vld [vmem:[%s3344_s9 + $0x3a] sm:$0xff] }
  0x7f   : > { %2912 = vmatprep.subr.msk.mxu1 %vm265_vm0, %v3486_v31  ;;  %4554 = vst [vmem:[#allocation42_spill] sm:$0xff] %v3836_v29  ;;  %v3839_v31 = vld [vmem:[%s3344_s9 + $0xf2] sm:$0xff] }
  0x80   : > { %4555 = vst [vmem:[#allocation43_spill] sm:$0xff] %v3839_v31 }
  0x81   : > { %2877 = vmatpush3.xpose.msk.msra.mxu0 %vm265_vm0, %v3822_v25 }
  0x82   : > { %2913 = vmatpush3.xpose.msk.msra.mxu1 %vm265_vm0, %v3500_v33  ;;  %2878 = vmatprep.subr.msk.mxu0 %vm265_vm0, %v3825_v27  ;;  %v3850_v33 = vld [vmem:[%s3344_s9 + $0x32] sm:$0xff] }
  0x83   : > { %2914 = vmatprep.subr.msk.mxu1 %vm265_vm0, %v3506_v35  ;;  %4556 = vst [vmem:[#allocation44_spill] sm:$0xff] %v3850_v33  ;;  %v3853_v35 = vld [vmem:[%s3344_s9 + $0xe2] sm:$0xff] }
  0x85   : > { %2879 = vmatpush3.xpose.msk.msra.mxu0 %vm265_vm0, %v3836_v29 }
  0x86   : > { %2915 = vmatpush3.xpose.msk.msra.mxu1 %vm265_vm0, %v3520_v37  ;;  %2880 = vmatprep.subr.msk.mxu0 %vm265_vm0, %v3839_v31  ;;  %v3864_v37 = vld [vmem:[%s3344_s9 + $0x22] sm:$0xff] }
  0x87   : > { %2916 = vmatprep.subr.msk.mxu1 %vm265_vm0, %v3526_v39  ;;  %v3867_v39 = vld [vmem:[%s3344_s9 + $0xda] sm:$0xff] }
  0x89   : > { %2881 = vmatpush3.xpose.msk.msra.mxu0 %vm265_vm0, %v3850_v33 }
  0x8a   : > { %2917 = vmatpush3.xpose.msk.msra.mxu1 %vm265_vm0, %v3540_v41  ;;  %2882 = vmatprep.subr.msk.mxu0 %vm265_vm0, %v3853_v35  ;;  %v3881_v41 = vld [vmem:[%s3344_s9 + $0xca] sm:$0xff] }
  0x8b   : > { %2918 = vmatprep.subr.msk.mxu1 %vm265_vm0, %v3546_v43  ;;  %v3878_v43 = vld [vmem:[%s3344_s9 + $0x1a] sm:$0xff] }
  0x8c   : > { %4557 = vst [vmem:[#allocation45_spill] sm:$0xff] %v3878_v43 }
  0x8d   : > { %2883 = vmatpush3.xpose.msk.msra.mxu0 %vm265_vm0, %v3864_v37 }
  0x8e   : > { %2919 = vmatpush3.xpose.msk.msra.mxu1 %vm265_vm0, %v3560_v45  ;;  %2884 = vmatprep.subr.msk.mxu0 %vm265_vm0, %v3867_v39  ;;  %v625_v45 = vld [vmem:[%s3344_s9 + $0xa] sm:$0xff] }
  0x8f   : > { %2920 = vmatprep.subr.msk.mxu1 %vm265_vm0, %v3566_v47  ;;  %v3904_v47 = vld [vmem:[%s3344_s9 + $0x189] sm:$0xff] }
  0x91   : > { %2885 = vmatpush3.xpose.msk.msra.mxu0 %vm265_vm0, %v3878_v43  ;;  %v3907_v43 = vld [vmem:[%s3344_s9 + $0x18a] sm:$0xff] }
  0x92   : > { %2921 = vmatpush3.xpose.msk.msra.mxu1 %vm265_vm0, %v3580_v49  ;;  %2886 = vmatprep.subr.msk.mxu0 %vm265_vm0, %v3881_v41  ;;  %v624_v49 = vld [vmem:[%s3344_s9 + $0x2] sm:$0xff] }
  0x93   : > { %2922 = vmatprep.subr.msk.mxu1 %vm265_vm0, %v3586_v51 }
  0x95   : > { %2887 = vmatpush3.xpose.msk.msra.mxu0 %vm265_vm0, %v625_v45  ;;  %v2337_v45 = vld [vmem:[%s4460_s1 + $0x28] sm:$0xff] }
  0x96   : > { %2923 = vmatpush3.xpose.msk.msra.mxu1 %vm265_vm0, %v3600_v53  ;;  %2888 = vmatprep.subr.msk.mxu0 %vm265_vm0, %v3893_v50  ;;  %v3920_v53 = vld [vmem:[%s3344_s9 + $0x181] sm:$0xff] }
  0x97   : > { %2924 = vmatprep.subr.msk.mxu1 %vm265_vm0, %v3606_v55 }
  0x99   : > { %2889 = vmatpush3.xpose.msk.msra.mxu0 %vm265_vm0, %v624_v49  ;;  %v3927_v49 = vld [vmem:[%s3344_s9 + $0x182] sm:$0xff] }
  0x9a   : > { %2925 = vmatpush3.xpose.msk.msra.mxu1 %vm265_vm0, %v3620_v57  ;;  %2930 = vmatprep.subr.msk.mxu0 %vm265_vm0, %v3904_v47  ;;  %v2405_v57 = vld [vmem:[%s4460_s1 + $0x38] sm:$0xff] }
  0x9b   : > { %2966 = vmatprep.subr.msk.mxu1 %vm265_vm0, %v3907_v43 }
  0x9c   : > { %2891 = vmatmul.mubr.msk.f32.vlgmr.msra.gmra.mxu0 %vm265_vm0, %v3704_v59  ;;  %v3952_v59 = vld [vmem:[%s4460_s1 + $0x50] sm:$0xff] }
  0x9d   : > { %2927 = vmatmul.mubr.msk.f32.vlgmr.msra.gmra.mxu1 %vm265_vm0, %v3709_v48  ;;  %2931 = vmatpush3.xpose.msk.msra.mxu0 %vm265_vm0, %v3623_v58  ;;  %v3947_v48 = vld [vmem:[%s4460_s1 + $0x40] sm:$0xff] }
  0x9e   : > { %2967 = vmatpush3.xpose.msk.msra.mxu1 %vm265_vm0, %v3881_v41  ;;  %2892 = vmatprep.mubr.msk.f32.mxu0 %vm265_vm0, %v2337_v45 }
  0x9f   : > { %2932 = vmatprep.subr.msk.mxu0 %vm265_vm0, %v3920_v53  ;;  %2968 = vmatprep.subr.msk.mxu1 %vm265_vm0, %v3927_v49 }
  0xa0   : > { %2928 = vmatprep.mubr.msk.f32.mxu1 %vm265_vm0, %v2405_v57  ;;  %2893 = vmatmul.mubr.msk.f32.gmra.mxu0 %vm265_vm0, %v2337_v45  ;;  %v4558_v45 = vld [vmem:[#allocation28_spill] sm:$0xff] }
  0xa1   : > { %2929 = vmatmul.mubr.msk.f32.gmra.mxu1 %vm265_vm0, %v2405_v57  ;;  %2933 = vmatpush3.xpose.msk.msra.mxu0 %vm265_vm0, %v3639_v62  ;;  %v4559_v57 = vld [vmem:[#allocation30_spill] sm:$0xff] }
  0xa2   : > { %2969 = vmatpush3.xpose.msk.msra.mxu1 %vm265_vm0, %v3893_v50  ;;  %2934 = vmatprep.subr.msk.mxu0 %vm265_vm0, %v3347_v2 }
  0xa3   : > { %2970 = vmatprep.subr.msk.mxu1 %vm265_vm0, %v3653_v52  ;;  %2962 = vmatprep.mubr.msk.f32.mxu0 %vm265_vm0, %v3947_v48 }
  0xa4   : > { %2998 = vmatprep.mubr.msk.f32.mxu1 %vm265_vm0, %v3952_v59 }
  0xa5   : > { %2935 = vmatpush3.xpose.msk.msra.mxu0 %vm265_vm0, %v3353_v4 }
  0xa6   : > { %2971 = vmatpush3.xpose.msk.msra.mxu1 %vm265_vm0, %v3665_v60  ;;  %2936 = vmatprep.subr.msk.mxu0 %vm265_vm0, %v3363_v6 }
  0xa7   : > { %2972 = vmatprep.subr.msk.mxu1 %vm265_vm0, %v3668_v61 }
  0xa9   : > { %2937 = vmatpush3.xpose.msk.msra.mxu0 %vm265_vm0, %v3377_v8 }
  0xaa   : > { %2973 = vmatpush3.xpose.msk.msra.mxu1 %vm265_vm0, %v3692_v0  ;;  %2938 = vmatprep.subr.msk.mxu0 %vm265_vm0, %v3383_v10 }
  0xab   : > { %2974 = vmatprep.subr.msk.mxu1 %vm265_vm0, %v3695_v1 }
  0xad   : > { %2939 = vmatpush3.xpose.msk.msra.mxu0 %vm265_vm0, %v3397_v12 }
  0xae   : > { %2975 = vmatpush3.xpose.msk.msra.mxu1 %vm265_vm0, %v3720_v54  ;;  %2940 = vmatprep.subr.msk.mxu0 %vm265_vm0, %v3403_v14 }
  0xaf   : > { %2976 = vmatprep.subr.msk.mxu1 %vm265_vm0, %v3723_v56 }
  0xb1   : > { %2941 = vmatpush3.xpose.msk.msra.mxu0 %vm265_vm0, %v3417_v16 }
  0xb2   : > { %2977 = vmatpush3.xpose.msk.msra.mxu1 %vm265_vm0, %v3738_v3  ;;  %2942 = vmatprep.subr.msk.mxu0 %vm265_vm0, %v3423_v18 }
  0xb3   : > { %2978 = vmatprep.subr.msk.mxu1 %vm265_vm0, %v3741_v63 }
  0xb5   : > { %2943 = vmatpush3.xpose.msk.msra.mxu0 %vm265_vm0, %v3437_v20 }
  0xb6   : > { %2979 = vmatpush3.xpose.msk.msra.mxu1 %vm265_vm0, %v3752_v5  ;;  %2944 = vmatprep.subr.msk.mxu0 %vm265_vm0, %v3443_v22 }
  0xb7   : > { %2980 = vmatprep.subr.msk.mxu1 %vm265_vm0, %v3755_v7 }
  0xb9   : > { %2945 = vmatpush3.xpose.msk.msra.mxu0 %vm265_vm0, %v3457_v24 }
  0xba   : > { %2981 = vmatpush3.xpose.msk.msra.mxu1 %vm265_vm0, %v3766_v9  ;;  %2946 = vmatprep.subr.msk.mxu0 %vm265_vm0, %v3463_v26 }
  0xbb   : > { %2982 = vmatprep.subr.msk.mxu1 %vm265_vm0, %v3769_v11 }
  0xbd   : > { %2947 = vmatpush3.xpose.msk.msra.mxu0 %vm265_vm0, %v3477_v28 }
  0xbe   : > { %2983 = vmatpush3.xpose.msk.msra.mxu1 %vm265_vm0, %v3780_v13  ;;  %2948 = vmatprep.subr.msk.mxu0 %vm265_vm0, %v3483_v30 }
  0xbf   : > { %2984 = vmatprep.subr.msk.mxu1 %vm265_vm0, %v3783_v15 }
  0xc1   : > { %2949 = vmatpush3.xpose.msk.msra.mxu0 %vm265_vm0, %v3497_v32 }
  0xc2   : > { %2985 = vmatpush3.xpose.msk.msra.mxu1 %vm265_vm0, %v3794_v17  ;;  %2950 = vmatprep.subr.msk.mxu0 %vm265_vm0, %v3503_v34 }
  0xc3   : > { %2986 = vmatprep.subr.msk.mxu1 %vm265_vm0, %v3797_v19 }
  0xc5   : > { %2951 = vmatpush3.xpose.msk.msra.mxu0 %vm265_vm0, %v3517_v36 }
  0xc6   : > { %2987 = vmatpush3.xpose.msk.msra.mxu1 %vm265_vm0, %v3808_v21  ;;  %2952 = vmatprep.subr.msk.mxu0 %vm265_vm0, %v3523_v38  ;;  %v2674_v21 = vld [vmem:[%s3344_s9 + $0x199] sm:$0xff] }
  0xc7   : > { %2988 = vmatprep.subr.msk.mxu1 %vm265_vm0, %v3811_v23  ;;  %v4563_v23 = vld [vmem:[#allocation45_spill] sm:$0xff] }
  0xc9   : > { %2953 = vmatpush3.xpose.msk.msra.mxu0 %vm265_vm0, %v3537_v40 }
  0xca   : > { %2989 = vmatpush3.xpose.msk.msra.mxu1 %vm265_vm0, %v3822_v25  ;;  %2954 = vmatprep.subr.msk.mxu0 %vm265_vm0, %v3543_v42  ;;  %v4562_v25 = vld [vmem:[#allocation33_spill] sm:$0xff] }
  0xcb   : > { %2990 = vmatprep.subr.msk.mxu1 %vm265_vm0, %v3825_v27  ;;  %v2675_v27 = vld [vmem:[%s3344_s9 + $0x1a1] sm:$0xff] }
  0xcd   : > { %2955 = vmatpush3.xpose.msk.msra.mxu0 %vm265_vm0, %v3557_v44 }
  0xce   : > { %2991 = vmatpush3.xpose.msk.msra.mxu1 %vm265_vm0, %v3836_v29  ;;  %2956 = vmatprep.subr.msk.mxu0 %vm265_vm0, %v3563_v46  ;;  %v4560_v29 = vld [vmem:[#allocation31_spill] sm:$0xff] }
  0xcf   : > { %2992 = vmatprep.subr.msk.mxu1 %vm265_vm0, %v3839_v31  ;;  %v4561_v31 = vld [vmem:[#allocation32_spill] sm:$0xff] }
  0xd1   : > { %2957 = vmatpush3.xpose.msk.msra.mxu0 %vm265_vm0, %v4558_v45 }
  0xd2   : > { %2993 = vmatpush3.xpose.msk.msra.mxu1 %vm265_vm0, %v3850_v33  ;;  %2958 = vmatprep.subr.msk.mxu0 %vm265_vm0, %v4559_v57  ;;  %v2607_v33 = vld [vmem:[%s3344_s9 + $0x1a0] sm:$0xff] }
  0xd3   : > { %2994 = vmatprep.subr.msk.mxu1 %vm265_vm0, %v3853_v35 }
  0xd5   : > { %2959 = vmatpush3.xpose.msk.msra.mxu0 %vm265_vm0, %v4560_v29  ;;  %v2473_v29 = vld [vmem:[%s4460_s1 + $0x48] sm:$0xff] }
  0xd6   : > { %2995 = vmatpush3.xpose.msk.msra.mxu1 %vm265_vm0, %v3864_v37  ;;  %2960 = vmatprep.subr.msk.mxu0 %vm265_vm0, %v4561_v31  ;;  %v2606_v37 = vld [vmem:[%s3344_s9 + $0x198] sm:$0xff] }
  0xd7   : > { %2996 = vmatprep.subr.msk.mxu1 %vm265_vm0, %v3867_v39 }
  0xd9   : > { %2961 = vmatpush3.xpose.msk.msra.mxu0 %vm265_vm0, %v4562_v25  ;;  %v4103_v25 = vld [vmem:[%s4460_s1 + $0x60] sm:$0xff] }
  0xda   : > { %2997 = vmatpush3.xpose.msk.msra.mxu1 %vm265_vm0, %v4563_v23  ;;  %3002 = vmatprep.subr.msk.mxu0 %vm265_vm0, %v2607_v33  ;;  %v2541_v23 = vld [vmem:[%s4460_s1 + $0x58] sm:$0xff]  ;;  %v4565_v33 = vld [vmem:[#allocation34_spill] sm:$0xff] }
  0xdb   : > { %3038 = vmatprep.subr.msk.mxu1 %vm265_vm0, %v2675_v27  ;;  %v4108_v27 = vld [vmem:[%s4460_s1 + $0x70] sm:$0xff] }
  0xdc   : > { %2963 = vmatmul.mubr.msk.f32.vlgmr.msra.gmra.mxu0 %vm265_vm0, %v3947_v48  ;;  %v4571_v48 = vld [vmem:[#allocation8_spill] sm:$0xff] }
  0xdd   : > { %2999 = vmatmul.mubr.msk.f32.vlgmr.msra.gmra.mxu1 %vm265_vm0, %v3952_v59  ;;  %3003 = vmatpush3.xpose.msk.msra.mxu0 %vm265_vm0, %v3586_v51  ;;  %v4566_v51 = vld [vmem:[#allocation37_spill] sm:$0xff] }
  0xde   : > { %3039 = vmatpush3.xpose.msk.msra.mxu1 %vm265_vm0, %v4559_v57  ;;  %2964 = vmatprep.mubr.msk.f32.mxu0 %vm265_vm0, %v2473_v29  ;;  %v4257_v59 = vld [vmem:[%s4460_s1 + $0x80] sm:$0xff] }
  0xdf   : > { %3004 = vmatprep.subr.msk.mxu0 %vm265_vm0, %v2606_v37  ;;  %3040 = vmatprep.subr.msk.mxu1 %vm265_vm0, %v2674_v21  ;;  %v4564_v21 = vld [vmem:[#allocation36_spill] sm:$0xff] }
  0xe0   : > { %3000 = vmatprep.mubr.msk.f32.mxu1 %vm265_vm0, %v2541_v23  ;;  %2965 = vmatmul.mubr.msk.f32.gmra.mxu0 %vm265_vm0, %v2473_v29 }
  0xe1   : > { %3001 = vmatmul.mubr.msk.f32.gmra.mxu1 %vm265_vm0, %v2541_v23  ;;  %3005 = vmatpush3.xpose.msk.msra.mxu0 %vm265_vm0, %v3606_v55  ;;  %v4568_v55 = vld [vmem:[#allocation5_spill] sm:$0xff] }
  0xe2   : > { %3041 = vmatpush3.xpose.msk.msra.mxu1 %vm265_vm0, %v4561_v31  ;;  %3006 = vmatprep.subr.msk.mxu0 %vm265_vm0, %v4564_v21  ;;  %v3248_v31 = vmov 0  }
  0xe3   : > { %3042 = vmatprep.subr.msk.mxu1 %vm265_vm0, %v3904_v47  ;;  %3034 = vmatprep.mubr.msk.f32.mxu0 %vm265_vm0, %v4103_v25  ;;  %v4567_v47 = vld [vmem:[#allocation35_spill] sm:$0xff] }
  0xe4   : > { %3070 = vmatprep.mubr.msk.f32.mxu1 %vm265_vm0, %v4108_v27  ;;  %3185 = vset.pattern.permute.xlu0 %v3248_v31 }
  0xe5   : > { %3007 = vmatpush3.xpose.msk.msra.mxu0 %vm265_vm0, %v4565_v33 }
  0xe6   : > { %3043 = vmatpush3.xpose.msk.msra.mxu1 %vm265_vm0, %v3623_v58  ;;  %3008 = vmatprep.subr.msk.mxu0 %vm265_vm0, %v4566_v51  ;;  %v4569_v58 = vld [vmem:[#allocation6_spill] sm:$0xff] }
  0xe7   : > { %3044 = vmatprep.subr.msk.mxu1 %vm265_vm0, %v3920_v53  ;;  %v4570_v53 = vld [vmem:[#allocation7_spill] sm:$0xff] }
  0xe9   : > { %3009 = vmatpush3.xpose.msk.msra.mxu0 %vm265_vm0, %v4567_v47 }
  0xea   : > { %3045 = vmatpush3.xpose.msk.msra.mxu1 %vm265_vm0, %v3639_v62  ;;  %3010 = vmatprep.subr.msk.mxu0 %vm265_vm0, %v4568_v55  ;;  %v4572_v62 = vld [vmem:[#allocation9_spill] sm:$0xff] }
  0xeb   : > { %3046 = vmatprep.subr.msk.mxu1 %vm265_vm0, %v3347_v2  ;;  %v4573_v2 = vld [vmem:[#allocation10_spill] sm:$0xff] }
  0xed   : > { %3011 = vmatpush3.xpose.msk.msra.mxu0 %vm265_vm0, %v4569_v58 }
  0xee   : > { %3047 = vmatpush3.xpose.msk.msra.mxu1 %vm265_vm0, %v3353_v4  ;;  %3012 = vmatprep.subr.msk.mxu0 %vm265_vm0, %v4570_v53  ;;  %v4574_v4 = vld [vmem:[#allocation11_spill] sm:$0xff] }
  0xef   : > { %3048 = vmatprep.subr.msk.mxu1 %vm265_vm0, %v3363_v6  ;;  %v4575_v6 = vld [vmem:[#allocation12_spill] sm:$0xff] }
  0xf1   : > { %3013 = vmatpush3.xpose.msk.msra.mxu0 %vm265_vm0, %v4571_v48 }
  0xf2   : > { %3049 = vmatpush3.xpose.msk.msra.mxu1 %vm265_vm0, %v3377_v8  ;;  %3014 = vmatprep.subr.msk.mxu0 %vm265_vm0, %v4572_v62  ;;  %v4576_v8 = vld [vmem:[#allocation13_spill] sm:$0xff] }
  0xf3   : > { %3050 = vmatprep.subr.msk.mxu1 %vm265_vm0, %v3383_v10  ;;  %v4577_v10 = vld [vmem:[#allocation14_spill] sm:$0xff] }
  0xf5   : > { %3015 = vmatpush3.xpose.msk.msra.mxu0 %vm265_vm0, %v4573_v2 }
  0xf6   : > { %3051 = vmatpush3.xpose.msk.msra.mxu1 %vm265_vm0, %v3397_v12  ;;  %3016 = vmatprep.subr.msk.mxu0 %vm265_vm0, %v4574_v4  ;;  %v4578_v12 = vld [vmem:[#allocation15_spill] sm:$0xff] }
  0xf7   : > { %3052 = vmatprep.subr.msk.mxu1 %vm265_vm0, %v3403_v14  ;;  %v4579_v14 = vld [vmem:[#allocation16_spill] sm:$0xff] }
  0xf9   : > { %3017 = vmatpush3.xpose.msk.msra.mxu0 %vm265_vm0, %v4575_v6 }
  0xfa   : > { %3053 = vmatpush3.xpose.msk.msra.mxu1 %vm265_vm0, %v3417_v16  ;;  %3018 = vmatprep.subr.msk.mxu0 %vm265_vm0, %v4576_v8  ;;  %v4580_v16 = vld [vmem:[#allocation17_spill] sm:$0xff] }
  0xfb   : > { %3054 = vmatprep.subr.msk.mxu1 %vm265_vm0, %v3423_v18  ;;  %v4581_v18 = vld [vmem:[#allocation18_spill] sm:$0xff] }
  0xfd   : > { %3019 = vmatpush3.xpose.msk.msra.mxu0 %vm265_vm0, %v4577_v10 }
  0xfe   : > { %3055 = vmatpush3.xpose.msk.msra.mxu1 %vm265_vm0, %v3437_v20  ;;  %3020 = vmatprep.subr.msk.mxu0 %vm265_vm0, %v4578_v12  ;;  %v4582_v20 = vld [vmem:[#allocation19_spill] sm:$0xff] }
  0xff   : > { %3056 = vmatprep.subr.msk.mxu1 %vm265_vm0, %v3443_v22  ;;  %v4583_v22 = vld [vmem:[#allocation20_spill] sm:$0xff] }
 0x101   : > { %3021 = vmatpush3.xpose.msk.msra.mxu0 %vm265_vm0, %v4579_v14 }
 0x102   : > { %3057 = vmatpush3.xpose.msk.msra.mxu1 %vm265_vm0, %v3457_v24  ;;  %3022 = vmatprep.subr.msk.mxu0 %vm265_vm0, %v4580_v16  ;;  %v4584_v24 = vld [vmem:[#allocation21_spill] sm:$0xff] }
 0x103   : > { %3058 = vmatprep.subr.msk.mxu1 %vm265_vm0, %v3463_v26  ;;  %v4585_v26 = vld [vmem:[#allocation22_spill] sm:$0xff] }
 0x105   : > { %3023 = vmatpush3.xpose.msk.msra.mxu0 %vm265_vm0, %v4581_v18 }
 0x106   : > { %3059 = vmatpush3.xpose.msk.msra.mxu1 %vm265_vm0, %v3477_v28  ;;  %3024 = vmatprep.subr.msk.mxu0 %vm265_vm0, %v4582_v20  ;;  %v4586_v28 = vld [vmem:[#allocation23_spill] sm:$0xff] }
 0x107   : > { %3060 = vmatprep.subr.msk.mxu1 %vm265_vm0, %v3483_v30  ;;  %v4587_v30 = vld [vmem:[#allocation24_spill] sm:$0xff] }
 0x109   : > { %3025 = vmatpush3.xpose.msk.msra.mxu0 %vm265_vm0, %v4583_v22 }
 0x10a   : > { %3061 = vmatpush3.xpose.msk.msra.mxu1 %vm265_vm0, %v3497_v32  ;;  %3026 = vmatprep.subr.msk.mxu0 %vm265_vm0, %v4584_v24  ;;  %v4588_v32 = vld [vmem:[#allocation25_spill] sm:$0xff] }
 0x10b   : > { %3062 = vmatprep.subr.msk.mxu1 %vm265_vm0, %v3503_v34  ;;  %v4589_v34 = vld [vmem:[#allocation26_spill] sm:$0xff] }
 0x10d   : > { %3027 = vmatpush3.xpose.msk.msra.mxu0 %vm265_vm0, %v4585_v26 }
 0x10e   : > { %3063 = vmatpush3.xpose.msk.msra.mxu1 %vm265_vm0, %v3517_v36  ;;  %3028 = vmatprep.subr.msk.mxu0 %vm265_vm0, %v4586_v28  ;;  %v4590_v36 = vld [vmem:[#allocation27_spill] sm:$0xff] }
 0x10f   : > { %3064 = vmatprep.subr.msk.mxu1 %vm265_vm0, %v3523_v38  ;;  %v2743_v38 = vld [vmem:[%s3344_s9 + $0x1a2] sm:$0xff] }
 0x111   : > { %3029 = vmatpush3.xpose.msk.msra.mxu0 %vm265_vm0, %v4587_v30 }
 0x112   : > { %3065 = vmatpush3.xpose.msk.msra.mxu1 %vm265_vm0, %v3537_v40  ;;  %3030 = vmatprep.subr.msk.mxu0 %vm265_vm0, %v4588_v32  ;;  %v4591_v40 = vld [vmem:[#allocation29_spill] sm:$0xff] }
 0x113   : > { %3066 = vmatprep.subr.msk.mxu1 %vm265_vm0, %v3543_v42  ;;  %v2609_v42 = vld [vmem:[%s4460_s1 + $0x68] sm:$0xff] }
 0x115   : > { %3031 = vmatpush3.xpose.msk.msra.mxu0 %vm265_vm0, %v4589_v34 }
 0x116   : > { %3067 = vmatpush3.xpose.msk.msra.mxu1 %vm265_vm0, %v3557_v44  ;;  %3032 = vmatprep.subr.msk.mxu0 %vm265_vm0, %v4590_v36  ;;  %v2742_v44 = vld [vmem:[%s3344_s9 + $0x19a] sm:$0xff] }
 0x117   : > { %3068 = vmatprep.subr.msk.mxu1 %vm265_vm0, %v3563_v46  ;;  %v2677_v46 = vld [vmem:[%s4460_s1 + $0x78] sm:$0xff] }
 0x119   : > { %3033 = vmatpush3.xpose.msk.msra.mxu0 %vm265_vm0, %v4591_v40 }
 0x11a   : > { %3069 = vmatpush3.xpose.msk.msra.mxu1 %vm265_vm0, %v4558_v45  ;;  %3074 = vmatprep.subr.msk.mxu0 %vm265_vm0, %v2743_v38  ;;  %v2152_v45 = vld [vmem:[%s4461_s2] sm:$0xff] }
 0x11b   : > { %3110 = vmatprep.subr.msk.mxu1 %vm265_vm0, %v2743_v38  ;;  %2156 = vperm.xlu0 %3185, %v2152_v45  }
 0x11c   : > { %3035 = vmatmul.mubr.msk.f32.vlgmr.msra.gmra.mxu0 %vm265_vm0, %v4103_v25 }
 0x11d   : > { %3071 = vmatmul.mubr.msk.f32.vlgmr.msra.gmra.mxu1 %vm265_vm0, %v4108_v27  ;;  %3075 = vmatpush3.xpose.msk.msra.mxu0 %vm265_vm0, %v3853_v35 }
 0x11e   : > { %3126 = vmatpush3.xpose.msk.msra.mxu1 %vm265_vm0, %v3853_v35  ;;  %3036 = vmatprep.mubr.msk.f32.mxu0 %vm265_vm0, %v2609_v42  ;;  %v4262_v35 = vld [vmem:[%s4460_s1 + $0x88] sm:$0xff] }
 0x11f   : > { %3076 = vmatprep.subr.msk.mxu0 %vm265_vm0, %v2742_v44  ;;  %3111 = vmatprep.subr.msk.mxu1 %vm265_vm0, %v2742_v44 }
 0x120   : > { %3072 = vmatprep.mubr.msk.f32.mxu1 %vm265_vm0, %v2677_v46  ;;  %3037 = vmatmul.mubr.msk.f32.gmra.mxu0 %vm265_vm0, %v2609_v42 }
 0x121   : > { %3073 = vmatmul.mubr.msk.f32.gmra.mxu1 %vm265_vm0, %v2677_v46  ;;  %3077 = vmatpush3.xpose.msk.msra.mxu0 %vm265_vm0, %v3867_v39 }
 0x122   : > { %3127 = vmatpush3.xpose.msk.msra.mxu1 %vm265_vm0, %v3867_v39  ;;  %3078 = vmatprep.subr.msk.mxu0 %vm265_vm0, %v3907_v43  ;;  %v2153_v39 = vld [vmem:[%s4461_s2 + $0x8] sm:$0xff] }
 0x123   : > { %3112 = vmatprep.subr.msk.mxu1 %vm265_vm0, %v3907_v43  ;;  %3106 = vmatprep.mubr.msk.f32.mxu0 %vm265_vm0, %v4257_v59  ;;  %v613_v43 = vpop.f32.mrf.mxu1 }
 0x124   : > { %3108 = vmatprep.mubr.msk.f32.mxu1 %vm265_vm0, %v4262_v35  ;;  %2161 = vperm.xlu0 %3185, %v2153_v39  }
 0x125   : > { %3079 = vmatpush3.xpose.msk.msra.mxu0 %vm265_vm0, %v3881_v41 }
 0x126   : > { %3128 = vmatpush3.xpose.msk.msra.mxu1 %vm265_vm0, %v3881_v41  ;;  %3080 = vmatprep.subr.msk.mxu0 %vm265_vm0, %v3927_v49 }
 0x127   : > { %3113 = vmatprep.subr.msk.mxu1 %vm265_vm0, %v3927_v49 }
 0x129   : > { %3081 = vmatpush3.xpose.msk.msra.mxu0 %vm265_vm0, %v3893_v50 }
 0x12a   : > { %3129 = vmatpush3.xpose.msk.msra.mxu1 %vm265_vm0, %v3893_v50  ;;  %3082 = vmatprep.subr.msk.mxu0 %vm265_vm0, %v3653_v52 }
 0x12b   : > { %3114 = vmatprep.subr.msk.mxu1 %vm265_vm0, %v3653_v52  ;;  %v615_v52 = vpop.f32.mrf.mxu1 }
 0x12d   : > { %3083 = vmatpush3.xpose.msk.msra.mxu0 %vm265_vm0, %v3665_v60 }
 0x12e   : > { %3130 = vmatpush3.xpose.msk.msra.mxu1 %vm265_vm0, %v3665_v60  ;;  %3084 = vmatprep.subr.msk.mxu0 %vm265_vm0, %v3668_v61  ;;  %v619_v60 = vpop.f32.mrf.mxu1 }
 0x12f   : > { %3115 = vmatprep.subr.msk.mxu1 %vm265_vm0, %v3668_v61 }
 0x131   : > { %3085 = vmatpush3.xpose.msk.msra.mxu0 %vm265_vm0, %v3692_v0 }
 0x132   : > { %3131 = vmatpush3.xpose.msk.msra.mxu1 %vm265_vm0, %v3692_v0  ;;  %3086 = vmatprep.subr.msk.mxu0 %vm265_vm0, %v3695_v1  ;;  %v621_v0 = vpop.f32.mrf.mxu1 }
 0x133   : > { %3116 = vmatprep.subr.msk.mxu1 %vm265_vm0, %v3695_v1 }
 0x135   : > { %3087 = vmatpush3.xpose.msk.msra.mxu0 %vm265_vm0, %v3720_v54 }
 0x136   : > { %3132 = vmatpush3.xpose.msk.msra.mxu1 %vm265_vm0, %v3720_v54  ;;  %3088 = vmatprep.subr.msk.mxu0 %vm265_vm0, %v3723_v56 }
 0x137   : > { %3117 = vmatprep.subr.msk.mxu1 %vm265_vm0, %v3723_v56 }
 0x139   : > { %3089 = vmatpush3.xpose.msk.msra.mxu0 %vm265_vm0, %v3738_v3 }
 0x13a   : > { %3133 = vmatpush3.xpose.msk.msra.mxu1 %vm265_vm0, %v3738_v3  ;;  %3090 = vmatprep.subr.msk.mxu0 %vm265_vm0, %v3741_v63  ;;  %v4592_v3 = vld [vmem:[#allocation38_spill] sm:$0xff] }
 0x13b   : > { %3118 = vmatprep.subr.msk.mxu1 %vm265_vm0, %v3741_v63 }
 0x13d   : > { %3091 = vmatpush3.xpose.msk.msra.mxu0 %vm265_vm0, %v3752_v5 }
 0x13e   : > { %3134 = vmatpush3.xpose.msk.msra.mxu1 %vm265_vm0, %v3752_v5  ;;  %3092 = vmatprep.subr.msk.mxu0 %vm265_vm0, %v3755_v7  ;;  %v4593_v5 = vld [vmem:[#allocation39_spill] sm:$0xff] }
 0x13f   : > { %3119 = vmatprep.subr.msk.mxu1 %vm265_vm0, %v3755_v7  ;;  %v4594_v7 = vld [vmem:[#allocation40_spill] sm:$0xff] }
 0x141   : > { %3093 = vmatpush3.xpose.msk.msra.mxu0 %vm265_vm0, %v3766_v9 }
 0x142   : > { %3135 = vmatpush3.xpose.msk.msra.mxu1 %vm265_vm0, %v3766_v9  ;;  %3094 = vmatprep.subr.msk.mxu0 %vm265_vm0, %v3769_v11  ;;  %v4595_v9 = vld [vmem:[#allocation41_spill] sm:$0xff] }
 0x143   : > { %3120 = vmatprep.subr.msk.mxu1 %vm265_vm0, %v3769_v11  ;;  %v4596_v11 = vld [vmem:[#allocation42_spill] sm:$0xff] }
 0x145   : > { %3095 = vmatpush3.xpose.msk.msra.mxu0 %vm265_vm0, %v3780_v13 }
 0x146   : > { %3136 = vmatpush3.xpose.msk.msra.mxu1 %vm265_vm0, %v3780_v13  ;;  %3096 = vmatprep.subr.msk.mxu0 %vm265_vm0, %v3783_v15  ;;  %v4597_v13 = vld [vmem:[#allocation43_spill] sm:$0xff] }
 0x147   : > { %3121 = vmatprep.subr.msk.mxu1 %vm265_vm0, %v3783_v15  ;;  %v4598_v15 = vld [vmem:[#allocation44_spill] sm:$0xff] }
 0x149   : > { %3097 = vmatpush3.xpose.msk.msra.mxu0 %vm265_vm0, %v3794_v17 }
 0x14a   : > { %3137 = vmatpush3.xpose.msk.msra.mxu1 %vm265_vm0, %v3794_v17  ;;  %3098 = vmatprep.subr.msk.mxu0 %vm265_vm0, %v3797_v19  ;;  %v434_v17 = vpop.f32.mrf.mxu0 }
 0x14b   : > { %3122 = vmatprep.subr.msk.mxu1 %vm265_vm0, %v3797_v19  ;;  %v614_v51 = vadd.f32 %v613_v43, %v434_v17 }
 0x14c   : > { %v436_v19 = vpop.f32.mrf.mxu0 }
 0x14d   : > { %3099 = vmatpush3.xpose.msk.msra.mxu0 %vm265_vm0, %v4592_v3  ;;  %v616_v58 = vadd.f32 %v615_v52, %v436_v19 }
 0x14e   : > { %3138 = vmatpush3.xpose.msk.msra.mxu1 %vm265_vm0, %v4592_v3  ;;  %3100 = vmatprep.subr.msk.mxu0 %vm265_vm0, %v4593_v5  ;;  %v440_v41 = vpop.f32.mrf.mxu0 }
 0x14f   : > { %3123 = vmatprep.subr.msk.mxu1 %vm265_vm0, %v4593_v5  ;;  %v620_v31 = vadd.f32 %v619_v60, %v440_v41 }
 0x150   : > { %v442_v50 = vpop.f32.mrf.mxu0 }
 0x151   : > { %3101 = vmatpush3.xpose.msk.msra.mxu0 %vm265_vm0, %v4594_v7  ;;  %v622_v53 = vadd.f32 %v621_v0, %v442_v50  ;;  %v2174_v0 = vld [vmem:[%s4462_s3 + $0x10] sm:$0xff] }
 0x152   : > { %3139 = vmatpush3.xpose.msk.msra.mxu1 %vm265_vm0, %v4594_v7  ;;  %3102 = vmatprep.subr.msk.mxu0 %vm265_vm0, %v4595_v9 }
 0x153   : > { %3124 = vmatprep.subr.msk.mxu1 %vm265_vm0, %v4595_v9 }
 0x155   : > { %3103 = vmatpush3.xpose.msk.msra.mxu0 %vm265_vm0, %v4596_v11 }
 0x156   : > { %3140 = vmatpush3.xpose.msk.msra.mxu1 %vm265_vm0, %v4596_v11  ;;  %3104 = vmatprep.subr.msk.mxu0 %vm265_vm0, %v4597_v13 }
 0x157   : > { %3125 = vmatprep.subr.msk.mxu1 %vm265_vm0, %v4597_v13 }
 0x159   : > { %3105 = vmatpush3.xpose.msk.msra.mxu0 %vm265_vm0, %v4598_v15 }
 0x15a   : > { %3141 = vmatpush3.xpose.msk.msra.mxu1 %vm265_vm0, %v4598_v15 }
 0x15c   : > { %3107 = vmatmul.mubr.msk.f32.vlgmr.msra.gmra.mxu0 %vm265_vm0, %v4257_v59  ;;  %v827_v63 = vpop.f32.mrf.mxu0 }
 0x15d   : > { %3109 = vmatmul.mubr.msk.f32.vlgmr.msra.gmra.mxu1 %vm265_vm0, %v4262_v35  ;;  %v1046_v54 = vpop.f32.mrf.mxu1  ;;  %v838_v48 = vadd.f32 %v827_v63, %v614_v51 }
 0x15e   : > { %v829_v61 = vpop.f32.mrf.mxu0 }
 0x15f   : > { %v1048_v49 = vpop.f32.mrf.mxu1  ;;  %v839_v2 = vadd.f32 %v829_v61, %v616_v58  ;;  %v1057_v10 = vadd.f32 %v1046_v54, %v838_v48  ;;  %v2172_v61 = vld [vmem:[%s4462_s3] sm:$0xff] }
 0x160   : > { %v833_v1 = vpop.f32.mrf.mxu0 }
 0x161   : > { %v1052_v29 = vpop.f32.mrf.mxu1  ;;  %v840_v62 = vadd.f32 %v833_v1, %v620_v31  ;;  %v1058_v16 = vadd.f32 %v1048_v49, %v839_v2 }
 0x162   : > { %v835_v56 = vpop.f32.mrf.mxu0 }
 0x163   : > { %v1054_v23 = vpop.f32.mrf.mxu1  ;;  %v841_v4 = vadd.f32 %v835_v56, %v622_v53  ;;  %v1059_v12 = vadd.f32 %v1052_v29, %v840_v62  ;;  %v2175_v29 = vld [vmem:[%s4462_s3 + $0x18] sm:$0xff] }
 0x165   : > { %v1060_v18 = vadd.f32 %v1054_v23, %v841_v4 }
 0x196   : > { %v2157_v59 = vpop.permute.xlu0 %2156 }
 0x19c   : > { %v1264_v57 = vpop.f32.mrf.mxu0 }
 0x19d   : > { %v1482_v25 = vpop.f32.mrf.mxu1  ;;  %v1275_v20 = vadd.f32 %v1264_v57, %v1057_v10  ;;  %v2173_v57 = vld [vmem:[%s4462_s3 + $0x8] sm:$0xff] }
 0x19e   : > { %v1266_v37 = vpop.f32.mrf.mxu0 }
 0x19f   : > { %v1484_v21 = vpop.f32.mrf.mxu1  ;;  %v1276_v26 = vadd.f32 %v1266_v37, %v1058_v16  ;;  %v1493_v32 = vadd.f32 %v1482_v25, %v1275_v20  ;;  %v2162_v15 = vpop.permute.xlu0 %2161 }
 0x1a0   : > { %v1270_v27 = vpop.f32.mrf.mxu0 }
 0x1a1   : > { %v1488_v47 = vpop.f32.mrf.mxu1  ;;  %v1277_v22 = vadd.f32 %v1270_v27, %v1059_v12  ;;  %v1494_v40 = vadd.f32 %v1484_v21, %v1276_v26 }
 0x1a2   : > { %v1272_v33 = vpop.f32.mrf.mxu0 }
 0x1a3   : > { %v1490_v6 = vpop.f32.mrf.mxu1  ;;  %v1278_v28 = vadd.f32 %v1272_v33, %v1060_v18  ;;  %v1495_v34 = vadd.f32 %v1488_v47, %v1277_v22 }
 0x1a5   : > { %v1496_v42 = vadd.f32 %v1490_v6, %v1278_v28 }
 0x1dc   : > { %v1701_v55 = vpop.f32.mrf.mxu0 }
 0x1dd   : > { %v1919_v14 = vpop.f32.mrf.mxu1  ;;  %v1712_v44 = vadd.f32 %v1701_v55, %v1493_v32 }
 0x1de   : > { %v1703_v8 = vpop.f32.mrf.mxu0 }
 0x1df   : > { %v1921_v30 = vpop.f32.mrf.mxu1  ;;  %v1713_v35 = vadd.f32 %v1703_v8, %v1494_v40  ;;  %v1930_v3 = vadd.f32 %v1919_v14, %v1712_v44 }
 0x1e0   : > { %v1707_v24 = vpop.f32.mrf.mxu0 }
 0x1e1   : > { %v1925_v38 = vpop.f32.mrf.mxu1  ;;  %v1714_v46 = vadd.f32 %v1707_v24, %v1495_v34  ;;  %v1931_v11 = vadd.f32 %v1921_v30, %v1713_v35 }
 0x1e2   : > { %v1709_v36 = vpop.f32.mrf.mxu0 }
 0x1e3   : > { %v1715_v45 = vadd.f32 %v1709_v36, %v1496_v42  ;;  %v1927_v39 = vpop.f32.mrf.mxu1  ;;  %v1932_v5 = vadd.f32 %v1925_v38, %v1714_v46 }
 0x1e5   : > { %v1933_v13 = vadd.f32 %v1927_v39, %v1715_v45 }
 0x21c   : > { %v2137_v7 = vpop.f32.mrf.mxu0 }
 0x21d   : > { %v2143_v9 = vpop.f32.mrf.mxu1  ;;  %v2148_v17 = vadd.f32 %v2137_v7, %v1930_v3 }
 0x21e   : > { %v2150_v19 = vadd.f32 %v2143_v9, %v1932_v5  ;;  %v2139_v41 = vpop.f32.mrf.mxu0 }
 0x21f   : > { %v2145_v43 = vpop.f32.mrf.mxu1  ;;  %v2164_v50 = vadd.f32 %v2157_v59, %v2148_v17  ;;  %v2149_v63 = vadd.f32 %v2139_v41, %v1931_v11 }
 0x220   : > { %v2166_v52 = vadd.f32 %v2162_v15, %v2150_v19  ;;  %v2151_v60 = vadd.f32 %v2145_v43, %v1933_v13 }
 0x221   : > { %v2168_v1 = vmax.f32 %v2164_v50, 0.0  ;;  %v2165_v56 = vadd.f32 %v2157_v59, %v2149_v63 }
 0x222   : > { %v2170_v54 = vmax.f32 %v2166_v52, 0.0  ;;  %v2167_v49 = vadd.f32 %v2162_v15, %v2151_v60 }
 0x223   : > { %v2176_v37 = vmul.f32 %v2172_v61, %v2168_v1  ;;  %v2169_v25 = vmax.f32 %v2165_v56, 0.0 }
 0x224   : > { %v2178_v23 = vmul.f32 %v2174_v0, %v2170_v54  ;;  %v2171_v27 = vmax.f32 %v2167_v49, 0.0 }
 0x225   : > { %2180 = vst [vmem:[%s190_s28] sm:$0xff] %v2176_v37  ;;  %v2177_v21 = vmul.f32 %v2173_v57, %v2169_v25 }
 0x226   : > { %2182 = vst [vmem:[%s190_s28 + $0x10] sm:$0xff] %v2178_v23  ;;  %v2179_v33 = vmul.f32 %v2175_v29, %v2171_v27 }
 0x227   : > { %2181 = vst [vmem:[%s190_s28 + $0x8] sm:$0xff] %v2177_v21 }
 0x228   : > { %2183 = vst [vmem:[%s190_s28 + $0x18] sm:$0xff] %v2179_v33 }
 0x229   : > { %3199 = shalt.err (!%p3196_p3)
}
 0x22a   : > { %s3200_s13 = scalar_lea.hbm %s4413_s11, 512  ;;  %s3204_s28 = scalar_lea.hbm %s4463_s4, 1024 }
 0x22b   : > { %p3201_p4 = scmp.ne.s32.totalorder %s4413_s11, %s3200_s13  ;;  %p3205_p9 = scmp.lt.s32.totalorder %s4413_s11, %s4463_s4 }
 0x22c   : > { %p3206_p10 = scmp.lt.s32.totalorder %s3204_s28, %s3200_s13 }
 0x22d   : > { %p3202_p7 = pnand %p3201_p4, %p3315_p5 }
 0x22e   : > { %p3207_p11 = por %p3206_p10, %p3205_p9 }
 0x22f   : > { %p3203_p8 = pneg %p3202_p7 }
 0x231   : > { %p3208_p12 = pnand %p3207_p11, %p3203_p8 }
 0x233   : > { %3211 = shalt.err (!%p3208_p12)
}
 0x234   : > { %s3250_s5 = smov 256   ;;  %s3251_s6 = smov 16  }
 0x235   : > { %3143 = dma.vmem_to_hbm [thread:$0]  (%p3315_p5), %s4415_s29, 512, %s4413_s11, %s4419_s19, %s3250_s5, %s3250_s5, %s3251_s6  }
 0x236 PF: > { %p3149_p13 = scmp.ge.s32.totalorder %s3246_s18, 2  ;;  %s2213_s7 = sand.u32 1, %s3234_s15  }
 0x237   : > { %s2214_s8 = scalar_lea.sflag [#allocation3], %s2213_s7 }
 0x238   : > { %p3146_p0 = pnand %p3149_p13, %p3319_p6 }
 0x23a   : > { %p3147_p1 = pneg %p3146_p0 }
 0x23c   : > { %3229 = dma.done.wait (%p3147_p1), %s2214_s8, 512  }
 0x23d   : > { %3231 = vsyncadd (%p3147_p1), %s2214_s8, 4294966784  ;;  %p14_p2 = scmp.ge.s32.totalorder %s3302_s21, 4   ;;  %s4599_s15 = smov %s3238_s16 }
 0x23e   : > { %s4600_s16 = smov %s3242_s17  ;;  %s4601_s17 = smov %s3313_s24 }
 0x23f   : > { %s4602_s18 = smov %s3302_s21  ;;  %16 = sbr.rel (!%p14_p2) target bundleno = 3 (0x3), region = 81 }
 0x244   :  { %2219 = vsyncpa [#allocation3], 1 }
 0x245   :  { %2221 = vsyncpa [#allocation3 + $0x1], 1 }

</bundles_post_ra>
